<compile_context>
chip_gen: v6e
topology: v6e:2x2x1
jax: 0.10.0
libtpu: 0.0.40
codegen_flags: <defaults>
</compile_context>

<pallas_src>
import jax
import jax.numpy as jnp
import numpy as np
from jax import lax
from jax.experimental import pallas as pl
from jax.experimental.pallas import tpu as pltpu

_EPS = 1e-5


def _im2col(v, N, Hp, Wp, C):
    """3x3 'SAME' im2col built entirely in registers.

    v: (N, Hp, Wp, C) value  ->  (N*Hp*Wp, 9*C) column matrix (tap-major, cin-minor),
    so a single matmul against the (9*C, Cout) flattened weights performs the conv.
    """
    M = N * Hp * Wp
    zrow = jnp.zeros((N, 1, Wp, C), v.dtype)
    vh = jnp.concatenate([zrow, v, zrow], axis=1)            # (N, Hp+2, Wp, C)
    zcol = jnp.zeros((N, Hp + 2, 1, C), v.dtype)
    pad = jnp.concatenate([zcol, vh, zcol], axis=2)          # (N, Hp+2, Wp+2, C)
    taps = [pad[:, ky:ky + Hp, kx:kx + Wp, :].reshape(M, C)
            for ky in range(3) for kx in range(3)]
    return jnp.concatenate(taps, axis=-1)                    # (M, 9*C)


def _down_kernel(x_ref, w1_ref, g1_ref, b1_ref, w2_ref, g2_ref, b2_ref, o_ref):
    """Single-invocation kernel, everything resident in VMEM / registers.

    x_ref:   (N, H, Wp, 2*Cin) f32   input, NHWC with adjacent W-column pairs packed on lanes
    w1_ref:  (9*Cin, Cmid)     f32   conv1 weights, im2col-flattened (ky,kx,cin)-major
    g1/b1:   (1, Cmid)         f32   BN1 gamma / beta
    w2_ref:  (Cout, 9*Cmid)    f32   conv2 weights, flattened + transposed
    g2/b2:   (Cout, 1)         f32   BN2 gamma / beta
    o_ref:   (Cout, N*Hp*Wp)   f32   output (lane-dense); wrapper reshapes to NCHW
    """
    N, H, Wp, C2 = x_ref.shape
    Cin = C2 // 2
    Hp = H // 2
    Cmid = w1_ref.shape[1]
    M = N * Hp * Wp
    inv_m = 1.0 / M

    # ---------------- MaxPool2d(2) ----------------
    x = x_ref[...]
    # W direction: max of the two contiguous Cin-wide lane halves (no strided sublane read).
    wmax = jnp.maximum(x[:, :, :, :Cin], x[:, :, :, Cin:])           # (N, H, Wp, Cin)
    # H direction: leading-dim split (free) + max.
    wmax = wmax.reshape(N, Hp, 2, Wp, Cin)
    pooled = jnp.maximum(wmax[:, :, 0, :, :], wmax[:, :, 1, :, :])   # (N, Hp, Wp, Cin)

    # ---------------- Conv1 (3x3, pad=1, no bias): one MXU matmul ----------------
    col1 = _im2col(pooled, N, Hp, Wp, Cin)                           # (M, 9*Cin), registers
    acc1 = jnp.dot(col1, w1_ref[...],
                   preferred_element_type=jnp.float32)               # (M, Cmid) f32

    # ---------------- BN1 (one-pass batch stats, clamped var) + ReLU ----------------
    s1 = jnp.sum(acc1, axis=0, keepdims=True)
    q1 = jnp.sum(acc1 * acc1, axis=0, keepdims=True)
    mean1 = s1 * inv_m
    var1 = jnp.maximum(q1 * inv_m - mean1 * mean1, 0.0)
    scale1 = g1_ref[...] * lax.rsqrt(var1 + _EPS)
    shift1 = b1_ref[...] - mean1 * scale1
    y1 = jnp.maximum(acc1 * scale1 + shift1, 0.0)                    # (M, Cmid)

    # ---------------- Conv2 (3x3, pad=1, no bias), transposed output ----------------
    col2 = _im2col(y1.reshape(N, Hp, Wp, Cmid), N, Hp, Wp, Cmid)     # (M, 9*Cmid), registers
    # (Cout, 9*Cmid) @ (M, 9*Cmid)^T -> (Cout, M): output stays lane-dense.
    acc2 = lax.dot_general(w2_ref[...], col2,
                           dimension_numbers=(((1,), (1,)), ((), ())),
                           preferred_element_type=jnp.float32)       # (Cout, M) f32

    # ---------------- BN2 (one-pass batch stats, clamped var) + ReLU ----------------
    s2 = jnp.sum(acc2, axis=1, keepdims=True)
    q2 = jnp.sum(acc2 * acc2, axis=1, keepdims=True)
    mean2 = s2 * inv_m
    var2 = jnp.maximum(q2 * inv_m - mean2 * mean2, 0.0)
    scale2 = g2_ref[...] * lax.rsqrt(var2 + _EPS)
    shift2 = b2_ref[...] - mean2 * scale2
    o_ref[...] = jnp.maximum(acc2 * scale2 + shift2, 0.0).astype(o_ref.dtype)


@jax.jit
def down_forward(x_nchw, w1, g1, b1, w2, g2, b2):
    """PyTorch `Down(in_channels, out_channels)` forward. Input/output in NCHW."""
    N, Cin, H, W = x_nchw.shape
    assert H % 2 == 0 and W % 2 == 0, "MaxPool2d(2) expects even spatial dims"
    Hp, Wp = H // 2, W // 2
    Cmid, Cout = w1.shape[3], w2.shape[3]
    M = N * Hp * Wp

    # NCHW -> NHWC, then pack adjacent W-column pairs onto the lane axis (free on XLA side).
    x_nhwc = jnp.transpose(x_nchw, (0, 2, 3, 1)).astype(jnp.float32)
    x_packed = x_nhwc.reshape(N, H, Wp, 2 * Cin)

    # Flatten conv weights for the single im2col matmul (all float32).
    w1f = w1.reshape(9 * Cin, Cmid).astype(jnp.float32)                 # (9*Cin, Cmid)
    w2t = jnp.transpose(w2.reshape(9 * Cmid, Cout)).astype(jnp.float32)  # (Cout, 9*Cmid)
    g1r = g1.reshape(1, Cmid).astype(jnp.float32)
    b1r = b1.reshape(1, Cmid).astype(jnp.float32)
    g2r = g2.reshape(Cout, 1).astype(jnp.float32)
    b2r = b2.reshape(Cout, 1).astype(jnp.float32)

    out_t = pl.pallas_call(
        _down_kernel,
        out_shape=jax.ShapeDtypeStruct((Cout, M), jnp.float32),
        in_specs=[pl.BlockSpec(memory_space=pltpu.MemorySpace.VMEM)] * 7,
        out_specs=pl.BlockSpec(memory_space=pltpu.MemorySpace.VMEM),
        compiler_params=pltpu.CompilerParams(
            vmem_limit_bytes=32 * 1024 * 1024),
    )(x_packed, w1f, g1r, b1r, w2t, g2r, b2r)

    # (Cout, N*Hp*Wp) -> (N, Cout, Hp, Wp): wrapper-side layout plumbing.
    return jnp.transpose(out_t.reshape(Cout, N, Hp, Wp), (1, 0, 2, 3))


def _reference_forward(x_nchw, w1, g1, b1, w2, g2, b2):
    """Pure-JAX (XLA) float32 reference."""
    x = jnp.transpose(x_nchw, (0, 2, 3, 1))
    x = lax.reduce_window(x, -jnp.inf, lax.max, (1, 2, 2, 1), (1, 2, 2, 1), "VALID")

    def conv_bn_relu(x, w, g, b):
        y = lax.conv_general_dilated(
            x, w, window_strides=(1, 1), padding="SAME",
            dimension_numbers=("NHWC", "HWIO", "NHWC"))
        mean = jnp.mean(y, axis=(0, 1, 2))
        var = jnp.mean((y - mean) ** 2, axis=(0, 1, 2))
        y = (y - mean) * lax.rsqrt(var + _EPS)
        y = y * g.reshape(-1) + b.reshape(-1)
        return jnp.maximum(y, 0.0)

    x = conv_bn_relu(x, w1, g1, b1)
    x = conv_bn_relu(x, w2, g2, b2)
    return jnp.transpose(x, (0, 3, 1, 2))


if __name__ == "__main__":
    # Down(in_channels=4, out_channels=8)  -> DoubleConv(4, 8), mid_channels = 8
    N, Cin, H, W = 2, 4, 16, 16
    Cmid, Cout = 8, 8

    key = jax.random.PRNGKey(0)
    k1, k2, k3, k4, k5, k6, kx = jax.random.split(key, 7)

    # Deterministic synthetic parameters (conv weights in HWIO; BN gamma/beta per channel).
    w1 = 0.1 * jax.random.normal(k1, (3, 3, Cin, Cmid), jnp.float32)
    g1 = 1.0 + 0.1 * jax.random.normal(k2, (1, Cmid), jnp.float32)
    b1 = 0.1 * jax.random.normal(k3, (1, Cmid), jnp.float32)
    w2 = 0.1 * jax.random.normal(k4, (3, 3, Cmid, Cout), jnp.float32)
    g2 = 1.0 + 0.1 * jax.random.normal(k5, (1, Cout), jnp.float32)
    b2 = 0.1 * jax.random.normal(k6, (1, Cout), jnp.float32)

    x = jax.random.normal(kx, (N, Cin, H, W), jnp.float32)   # NCHW, like PyTorch

    out = down_forward(x, w1, g1, b1, w2, g2, b2)
    out = jax.block_until_ready(out)

    ref = jax.block_until_ready(_reference_forward(x, w1, g1, b1, w2, g2, b2))

    assert out.shape == (N, Cout, H // 2, W // 2), out.shape
    # Both sides are f32; remaining differences are matmul-vs-conv accumulation order
    # (and default TPU matmul precision), so 2e-3 is comfortable.
    np.testing.assert_allclose(np.asarray(out), np.asarray(ref), atol=2e-3, rtol=2e-3)

    print("KERNEL_OK")
</pallas_src>

<mosaic_0001>
module attributes {stable_mosaic.version = 11 : i64} {
  func.func @_down_kernel(%arg0: memref<2x16x8x8xf32, #tpu.memory_space<vmem>>, %arg1: memref<36x8xf32, #tpu.memory_space<vmem>>, %arg2: memref<1x8xf32, #tpu.memory_space<vmem>>, %arg3: memref<1x8xf32, #tpu.memory_space<vmem>>, %arg4: memref<8x72xf32, #tpu.memory_space<vmem>>, %arg5: memref<8x1xf32, #tpu.memory_space<vmem>>, %arg6: memref<8x1xf32, #tpu.memory_space<vmem>>, %arg7: memref<8x128xf32, #tpu.memory_space<vmem>>) attributes {dimension_semantics = [], scalar_prefetch = 0 : i64, scratch_operands = 0 : i64, tpu.core_type = #tpu.core_type<tc>} {
    %c0 = arith.constant 0 : index
    %c0_0 = arith.constant 0 : index
    %c0_1 = arith.constant 0 : index
    %c0_2 = arith.constant 0 : index
    %0 = vector.load %arg0[%c0, %c0_0, %c0_1, %c0_2] : memref<2x16x8x8xf32, #tpu.memory_space<vmem>>, vector<2x16x8x8xf32>
    %1 = vector.extract_strided_slice %0 {offsets = [0, 0, 0, 0], sizes = [2, 16, 8, 4], strides = [1, 1, 1, 1]} : vector<2x16x8x8xf32> to vector<2x16x8x4xf32>
    %2 = vector.extract_strided_slice %0 {offsets = [0, 0, 0, 4], sizes = [2, 16, 8, 4], strides = [1, 1, 1, 1]} : vector<2x16x8x8xf32> to vector<2x16x8x4xf32>
    %3 = arith.maximumf %1, %2 : vector<2x16x8x4xf32>
    %4 = vector.shape_cast %3 : vector<2x16x8x4xf32> to vector<2x8x2x8x4xf32>
    %5 = vector.extract_strided_slice %4 {offsets = [0, 0, 0, 0, 0], sizes = [2, 8, 1, 8, 4], strides = [1, 1, 1, 1, 1]} : vector<2x8x2x8x4xf32> to vector<2x8x1x8x4xf32>
    %6 = vector.shape_cast %5 : vector<2x8x1x8x4xf32> to vector<2x8x8x4xf32>
    %7 = vector.extract_strided_slice %4 {offsets = [0, 0, 1, 0, 0], sizes = [2, 8, 1, 8, 4], strides = [1, 1, 1, 1, 1]} : vector<2x8x2x8x4xf32> to vector<2x8x1x8x4xf32>
    %8 = vector.shape_cast %7 : vector<2x8x1x8x4xf32> to vector<2x8x8x4xf32>
    %9 = arith.maximumf %6, %8 : vector<2x8x8x4xf32>
    %cst = arith.constant 0.000000e+00 : f32
    %10 = vector.broadcast %cst : f32 to vector<2x1x8x4xf32>
    %11 = tpu.concatenate %10, %9, %10 in 1 : vector<2x1x8x4xf32>, vector<2x8x8x4xf32>, vector<2x1x8x4xf32> -> vector<2x10x8x4xf32>
    %cst_3 = arith.constant 0.000000e+00 : f32
    %12 = vector.broadcast %cst_3 : f32 to vector<2x10x1x4xf32>
    %13 = tpu.concatenate %12, %11, %12 in 2 : vector<2x10x1x4xf32>, vector<2x10x8x4xf32>, vector<2x10x1x4xf32> -> vector<2x10x10x4xf32>
    %14 = vector.extract_strided_slice %13 {offsets = [0, 0, 0, 0], sizes = [2, 8, 8, 4], strides = [1, 1, 1, 1]} : vector<2x10x10x4xf32> to vector<2x8x8x4xf32>
    %15 = vector.shape_cast %14 : vector<2x8x8x4xf32> to vector<128x4xf32>
    %16 = vector.extract_strided_slice %13 {offsets = [0, 0, 1, 0], sizes = [2, 8, 8, 4], strides = [1, 1, 1, 1]} : vector<2x10x10x4xf32> to vector<2x8x8x4xf32>
    %17 = vector.shape_cast %16 : vector<2x8x8x4xf32> to vector<128x4xf32>
    %18 = vector.extract_strided_slice %13 {offsets = [0, 0, 2, 0], sizes = [2, 8, 8, 4], strides = [1, 1, 1, 1]} : vector<2x10x10x4xf32> to vector<2x8x8x4xf32>
    %19 = vector.shape_cast %18 : vector<2x8x8x4xf32> to vector<128x4xf32>
    %20 = vector.extract_strided_slice %13 {offsets = [0, 1, 0, 0], sizes = [2, 8, 8, 4], strides = [1, 1, 1, 1]} : vector<2x10x10x4xf32> to vector<2x8x8x4xf32>
    %21 = vector.shape_cast %20 : vector<2x8x8x4xf32> to vector<128x4xf32>
    %22 = vector.extract_strided_slice %13 {offsets = [0, 1, 1, 0], sizes = [2, 8, 8, 4], strides = [1, 1, 1, 1]} : vector<2x10x10x4xf32> to vector<2x8x8x4xf32>
    %23 = vector.shape_cast %22 : vector<2x8x8x4xf32> to vector<128x4xf32>
    %24 = vector.extract_strided_slice %13 {offsets = [0, 1, 2, 0], sizes = [2, 8, 8, 4], strides = [1, 1, 1, 1]} : vector<2x10x10x4xf32> to vector<2x8x8x4xf32>
    %25 = vector.shape_cast %24 : vector<2x8x8x4xf32> to vector<128x4xf32>
    %26 = vector.extract_strided_slice %13 {offsets = [0, 2, 0, 0], sizes = [2, 8, 8, 4], strides = [1, 1, 1, 1]} : vector<2x10x10x4xf32> to vector<2x8x8x4xf32>
    %27 = vector.shape_cast %26 : vector<2x8x8x4xf32> to vector<128x4xf32>
    %28 = vector.extract_strided_slice %13 {offsets = [0, 2, 1, 0], sizes = [2, 8, 8, 4], strides = [1, 1, 1, 1]} : vector<2x10x10x4xf32> to vector<2x8x8x4xf32>
    %29 = vector.shape_cast %28 : vector<2x8x8x4xf32> to vector<128x4xf32>
    %30 = vector.extract_strided_slice %13 {offsets = [0, 2, 2, 0], sizes = [2, 8, 8, 4], strides = [1, 1, 1, 1]} : vector<2x10x10x4xf32> to vector<2x8x8x4xf32>
    %31 = vector.shape_cast %30 : vector<2x8x8x4xf32> to vector<128x4xf32>
    %32 = tpu.concatenate %15, %17, %19, %21, %23, %25, %27, %29, %31 in 1 : vector<128x4xf32>, vector<128x4xf32>, vector<128x4xf32>, vector<128x4xf32>, vector<128x4xf32>, vector<128x4xf32>, vector<128x4xf32>, vector<128x4xf32>, vector<128x4xf32> -> vector<128x36xf32>
    %c0_4 = arith.constant 0 : index
    %c0_5 = arith.constant 0 : index
    %33 = vector.load %arg1[%c0_4, %c0_5] : memref<36x8xf32, #tpu.memory_space<vmem>>, vector<36x8xf32>
    %cst_6 = arith.constant dense<0.000000e+00> : vector<128x8xf32>
    %34 = tpu.matmul %32, %33, %cst_6 {dimension_numbers = #tpu.dot_dimension_numbers<[1], [0], [0], [1], [0, 0, 1, 1], [], []>} : vector<128x36xf32>, vector<36x8xf32>, vector<128x8xf32> -> vector<128x8xf32>
    %cst_7 = arith.constant dense<0.000000e+00> : vector<8xf32>
    %35 = vector.multi_reduction <add>, %34, %cst_7 [0] : vector<128x8xf32> to vector<8xf32>
    %36 = vector.shape_cast %35 : vector<8xf32> to vector<1x8xf32>
    %37 = arith.mulf %34, %34 : vector<128x8xf32>
    %cst_8 = arith.constant dense<0.000000e+00> : vector<8xf32>
    %38 = vector.multi_reduction <add>, %37, %cst_8 [0] : vector<128x8xf32> to vector<8xf32>
    %39 = vector.shape_cast %38 : vector<8xf32> to vector<1x8xf32>
    %cst_9 = arith.constant 7.812500e-03 : f32
    %40 = vector.broadcast %cst_9 : f32 to vector<1x8xf32>
    %41 = arith.mulf %36, %40 : vector<1x8xf32>
    %cst_10 = arith.constant 7.812500e-03 : f32
    %42 = vector.broadcast %cst_10 : f32 to vector<1x8xf32>
    %43 = arith.mulf %39, %42 : vector<1x8xf32>
    %44 = arith.mulf %41, %41 : vector<1x8xf32>
    %45 = arith.subf %43, %44 : vector<1x8xf32>
    %cst_11 = arith.constant 0.000000e+00 : f32
    %46 = vector.broadcast %cst_11 : f32 to vector<1x8xf32>
    %47 = arith.maximumf %45, %46 : vector<1x8xf32>
    %c0_12 = arith.constant 0 : index
    %c0_13 = arith.constant 0 : index
    %48 = vector.load %arg2[%c0_12, %c0_13] : memref<1x8xf32, #tpu.memory_space<vmem>>, vector<1x8xf32>
    %cst_14 = arith.constant 9.99999974E-6 : f32
    %49 = vector.broadcast %cst_14 : f32 to vector<1x8xf32>
    %50 = arith.addf %47, %49 : vector<1x8xf32>
    %51 = math.rsqrt %50 : vector<1x8xf32>
    %52 = arith.mulf %48, %51 : vector<1x8xf32>
    %c0_15 = arith.constant 0 : index
    %c0_16 = arith.constant 0 : index
    %53 = vector.load %arg3[%c0_15, %c0_16] : memref<1x8xf32, #tpu.memory_space<vmem>>, vector<1x8xf32>
    %54 = arith.mulf %41, %52 : vector<1x8xf32>
    %55 = arith.subf %53, %54 : vector<1x8xf32>
    %56 = vector.broadcast %52 : vector<1x8xf32> to vector<128x8xf32>
    %57 = arith.mulf %34, %56 : vector<128x8xf32>
    %58 = vector.broadcast %55 : vector<1x8xf32> to vector<128x8xf32>
    %59 = arith.addf %57, %58 : vector<128x8xf32>
    %cst_17 = arith.constant 0.000000e+00 : f32
    %60 = vector.broadcast %cst_17 : f32 to vector<128x8xf32>
    %61 = arith.maximumf %59, %60 : vector<128x8xf32>
    %62 = vector.shape_cast %61 : vector<128x8xf32> to vector<2x8x8x8xf32>
    %cst_18 = arith.constant 0.000000e+00 : f32
    %63 = vector.broadcast %cst_18 : f32 to vector<2x1x8x8xf32>
    %64 = tpu.concatenate %63, %62, %63 in 1 : vector<2x1x8x8xf32>, vector<2x8x8x8xf32>, vector<2x1x8x8xf32> -> vector<2x10x8x8xf32>
    %cst_19 = arith.constant 0.000000e+00 : f32
    %65 = vector.broadcast %cst_19 : f32 to vector<2x10x1x8xf32>
    %66 = tpu.concatenate %65, %64, %65 in 2 : vector<2x10x1x8xf32>, vector<2x10x8x8xf32>, vector<2x10x1x8xf32> -> vector<2x10x10x8xf32>
    %67 = vector.extract_strided_slice %66 {offsets = [0, 0, 0, 0], sizes = [2, 8, 8, 8], strides = [1, 1, 1, 1]} : vector<2x10x10x8xf32> to vector<2x8x8x8xf32>
    %68 = vector.shape_cast %67 : vector<2x8x8x8xf32> to vector<128x8xf32>
    %69 = vector.extract_strided_slice %66 {offsets = [0, 0, 1, 0], sizes = [2, 8, 8, 8], strides = [1, 1, 1, 1]} : vector<2x10x10x8xf32> to vector<2x8x8x8xf32>
    %70 = vector.shape_cast %69 : vector<2x8x8x8xf32> to vector<128x8xf32>
    %71 = vector.extract_strided_slice %66 {offsets = [0, 0, 2, 0], sizes = [2, 8, 8, 8], strides = [1, 1, 1, 1]} : vector<2x10x10x8xf32> to vector<2x8x8x8xf32>
    %72 = vector.shape_cast %71 : vector<2x8x8x8xf32> to vector<128x8xf32>
    %73 = vector.extract_strided_slice %66 {offsets = [0, 1, 0, 0], sizes = [2, 8, 8, 8], strides = [1, 1, 1, 1]} : vector<2x10x10x8xf32> to vector<2x8x8x8xf32>
    %74 = vector.shape_cast %73 : vector<2x8x8x8xf32> to vector<128x8xf32>
    %75 = vector.extract_strided_slice %66 {offsets = [0, 1, 1, 0], sizes = [2, 8, 8, 8], strides = [1, 1, 1, 1]} : vector<2x10x10x8xf32> to vector<2x8x8x8xf32>
    %76 = vector.shape_cast %75 : vector<2x8x8x8xf32> to vector<128x8xf32>
    %77 = vector.extract_strided_slice %66 {offsets = [0, 1, 2, 0], sizes = [2, 8, 8, 8], strides = [1, 1, 1, 1]} : vector<2x10x10x8xf32> to vector<2x8x8x8xf32>
    %78 = vector.shape_cast %77 : vector<2x8x8x8xf32> to vector<128x8xf32>
    %79 = vector.extract_strided_slice %66 {offsets = [0, 2, 0, 0], sizes = [2, 8, 8, 8], strides = [1, 1, 1, 1]} : vector<2x10x10x8xf32> to vector<2x8x8x8xf32>
    %80 = vector.shape_cast %79 : vector<2x8x8x8xf32> to vector<128x8xf32>
    %81 = vector.extract_strided_slice %66 {offsets = [0, 2, 1, 0], sizes = [2, 8, 8, 8], strides = [1, 1, 1, 1]} : vector<2x10x10x8xf32> to vector<2x8x8x8xf32>
    %82 = vector.shape_cast %81 : vector<2x8x8x8xf32> to vector<128x8xf32>
    %83 = vector.extract_strided_slice %66 {offsets = [0, 2, 2, 0], sizes = [2, 8, 8, 8], strides = [1, 1, 1, 1]} : vector<2x10x10x8xf32> to vector<2x8x8x8xf32>
    %84 = vector.shape_cast %83 : vector<2x8x8x8xf32> to vector<128x8xf32>
    %85 = tpu.concatenate %68, %70, %72, %74, %76, %78, %80, %82, %84 in 1 : vector<128x8xf32>, vector<128x8xf32>, vector<128x8xf32>, vector<128x8xf32>, vector<128x8xf32>, vector<128x8xf32>, vector<128x8xf32>, vector<128x8xf32>, vector<128x8xf32> -> vector<128x72xf32>
    %c0_20 = arith.constant 0 : index
    %c0_21 = arith.constant 0 : index
    %86 = vector.load %arg4[%c0_20, %c0_21] : memref<8x72xf32, #tpu.memory_space<vmem>>, vector<8x72xf32>
    %cst_22 = arith.constant dense<0.000000e+00> : vector<8x128xf32>
    %87 = tpu.matmul %86, %85, %cst_22 {dimension_numbers = #tpu.dot_dimension_numbers<[1], [1], [0], [0], [0, 0, 1, 0], [], []>} : vector<8x72xf32>, vector<128x72xf32>, vector<8x128xf32> -> vector<8x128xf32>
    %cst_23 = arith.constant dense<0.000000e+00> : vector<8xf32>
    %88 = vector.multi_reduction <add>, %87, %cst_23 [1] : vector<8x128xf32> to vector<8xf32>
    %89 = vector.shape_cast %88 : vector<8xf32> to vector<8x1xf32>
    %90 = arith.mulf %87, %87 : vector<8x128xf32>
    %cst_24 = arith.constant dense<0.000000e+00> : vector<8xf32>
    %91 = vector.multi_reduction <add>, %90, %cst_24 [1] : vector<8x128xf32> to vector<8xf32>
    %92 = vector.shape_cast %91 : vector<8xf32> to vector<8x1xf32>
    %cst_25 = arith.constant 7.812500e-03 : f32
    %93 = vector.broadcast %cst_25 : f32 to vector<8x1xf32>
    %94 = arith.mulf %89, %93 : vector<8x1xf32>
    %cst_26 = arith.constant 7.812500e-03 : f32
    %95 = vector.broadcast %cst_26 : f32 to vector<8x1xf32>
    %96 = arith.mulf %92, %95 : vector<8x1xf32>
    %97 = arith.mulf %94, %94 : vector<8x1xf32>
    %98 = arith.subf %96, %97 : vector<8x1xf32>
    %cst_27 = arith.constant 0.000000e+00 : f32
    %99 = vector.broadcast %cst_27 : f32 to vector<8x1xf32>
    %100 = arith.maximumf %98, %99 : vector<8x1xf32>
    %c0_28 = arith.constant 0 : index
    %c0_29 = arith.constant 0 : index
    %101 = vector.load %arg5[%c0_28, %c0_29] : memref<8x1xf32, #tpu.memory_space<vmem>>, vector<8x1xf32>
    %cst_30 = arith.constant 9.99999974E-6 : f32
    %102 = vector.broadcast %cst_30 : f32 to vector<8x1xf32>
    %103 = arith.addf %100, %102 : vector<8x1xf32>
    %104 = math.rsqrt %103 : vector<8x1xf32>
    %105 = arith.mulf %101, %104 : vector<8x1xf32>
    %c0_31 = arith.constant 0 : index
    %c0_32 = arith.constant 0 : index
    %106 = vector.load %arg6[%c0_31, %c0_32] : memref<8x1xf32, #tpu.memory_space<vmem>>, vector<8x1xf32>
    %107 = arith.mulf %94, %105 : vector<8x1xf32>
    %108 = arith.subf %106, %107 : vector<8x1xf32>
    %109 = vector.broadcast %105 : vector<8x1xf32> to vector<8x128xf32>
    %110 = arith.mulf %87, %109 : vector<8x128xf32>
    %111 = vector.broadcast %108 : vector<8x1xf32> to vector<8x128xf32>
    %112 = arith.addf %110, %111 : vector<8x128xf32>
    %cst_33 = arith.constant 0.000000e+00 : f32
    %113 = vector.broadcast %cst_33 : f32 to vector<8x128xf32>
    %114 = arith.maximumf %112, %113 : vector<8x128xf32>
    %c0_34 = arith.constant 0 : index
    %c0_35 = arith.constant 0 : index
    %115 = vector.load %arg7[%c0_34, %c0_35] : memref<8x128xf32, #tpu.memory_space<vmem>>, vector<8x128xf32>
    tpu.vector_store %arg7[%c0_34, %c0_35], %114 {strides = array<i32>} : memref<8x128xf32, #tpu.memory_space<vmem>>, vector<8x128xf32>,
    return
  }
}

</mosaic_0001>

<bundles_post_ra>
// kernel: down_forward.1
= control target key start
LH: loop header
LB: loop body
LE: loop exit
PB: predicated region body
PF: predicated region fallthrough
CT: control target
= control target key end

     0   :  { %v4177_v2 = vmov 0.0   ;;  %s2355_s28 = smov 124   ;;  %vm285_vm0 = vcmask 1040384   ;;  %vm350_vm1 = vcmask 1046528   ;;  %vm396_vm2 = vcmask 1045504   ;;  %s2356_s22 = smov 4   ;;  %s4169_s0 = inlined_call_operand.vmem [shape: f32[2,16,8,8], index: 0, kind: input, shape index: {}]   ;;  %s4170_s1 = inlined_call_operand.vmem [shape: f32[36,8], index: 1, kind: input, shape index: {}]   ;;  %s4171_s2 = inlined_call_operand.vmem [shape: f32[1,8], index: 2, kind: input, shape index: {}]   ;;  %s4172_s3 = inlined_call_operand.vmem [shape: f32[1,8], index: 3, kind: input, shape index: {}]   ;;  %s4173_s4 = inlined_call_operand.vmem [shape: f32[8,72], index: 4, kind: input, shape index: {}]   ;;  %s4174_s5 = inlined_call_operand.vmem [shape: f32[8,1], index: 5, kind: input, shape index: {}]   ;;  %s4175_s6 = inlined_call_operand.vmem [shape: f32[8,1], index: 6, kind: input, shape index: {}]   ;;  %s4176_s7 = inlined_call_operand.vmem [shape: f32[8,128], index: 7, kind: output, shape index: {}]  }
   0x1   :  { %v2413_v0 = vld [vmem:[%s4169_s0 + $0x10] sm:$0xff]  ;;  %v2418_v1 = vld [vmem:[%s4169_s0] sm:$0xff]  ;;  %2297 = vmatprep.subr.mxu1 %v4177_v2  ;;  %v2428_v3 = vld [vmem:[%s4169_s0 + $0x18] sm:$0xff]  ;;  %v251_v29 = vrot.slane %v4177_v2, 7  ;;  %s2359_s23 = smov 24   ;;  %s2360_s24 = smov 16  }
   0x2   :  { %94 = vrot.lane.b32.xlu1 %v2413_v0, %s2355_s28  ;;  %90 = vrot.lane.b32.xlu0 %v2418_v1, %s2355_s28  ;;  %v2433_v4 = vld [vmem:[%s4169_s0 + $0x8] sm:$0xff]  ;;  %v2447_v6 = vld [vmem:[%s4169_s0 + $0x20] sm:$0xff]  ;;  %s2361_s25 = smov 20   ;;  %s2362_s26 = smov 28   ;;  %vm1015_vm3 = vcmask 1043456   ;;  %vm827_vm4 = vcmask 31744  }
   0x3   :  { %v2442_v5 = vld [vmem:[%s4169_s0 + $0x28] sm:$0xff]  ;;  %v2456_v7 = vld [vmem:[%s4169_s0 + $0x38] sm:$0xff]  ;;  %v2461_v8 = vld [vmem:[%s4169_s0 + $0x30] sm:$0xff]  ;;  %v2619_v32 = vsel %vm285_vm0, 0.0, %v251_v29  ;;  %v303_v33 = vsel %vm285_vm0, %v251_v29, 0.0  ;;  %s2363_s15 = smov 32  }
   0x4   :  { %v2470_v9 = vld [vmem:[%s4169_s0 + $0x48] sm:$0xff]  ;;  %v2475_v10 = vld [vmem:[%s4169_s0 + $0x40] sm:$0xff]  ;;  %v2484_v11 = vld [vmem:[%s4169_s0 + $0x58] sm:$0xff]  ;;  %v351_v35 = vrot.slane %v2619_v32, 1  ;;  %v352_v36 = vrot.slane %v303_v33, 1  ;;  %v397_v39 = vrot.slane %v2619_v32, 2 }
   0x5   :  { %v2489_v12 = vld [vmem:[%s4169_s0 + $0x50] sm:$0xff]  ;;  %v2498_v13 = vld [vmem:[%s4169_s0 + $0x68] sm:$0xff]  ;;  %v2503_v14 = vld [vmem:[%s4169_s0 + $0x60] sm:$0xff]  ;;  %v398_v40 = vrot.slane %v303_v33, 2  ;;  %vm843_vm5 = vcmask 64512   ;;  %vm859_vm6 = vcmask 97280  }
   0x6   :  { %96 = vrot.lane.b32.xlu1 %v2428_v3, %s2355_s28  ;;  %92 = vrot.lane.b32.xlu0 %v2433_v4, %s2355_s28  ;;  %v2512_v15 = vld [vmem:[%s4169_s0 + $0x70] sm:$0xff]  ;;  %v2517_v16 = vld [vmem:[%s4169_s0 + $0x78] sm:$0xff]  ;;  %v2642_v38 = vsel %vm350_vm1, %v351_v35, %v352_v36  ;;  %vm876_vm7 = vcmask 130048   ;;  %vm893_vm8 = vcmask 162816   ;;  %vm910_vm9 = vcmask 195584   ;;  %s2365_s16 = smov 56  }
   0x7   :  { %v2526_v17 = vld [vmem:[%s4169_s0 + $0x80] sm:$0xff]  ;;  %v2531_v18 = vld [vmem:[%s4169_s0 + $0x88] sm:$0xff]  ;;  %v2540_v19 = vld [vmem:[%s4169_s0 + $0x90] sm:$0xff]  ;;  %v2648_v41 = vsel %vm396_vm2, %v397_v39, %v398_v40  ;;  %vm927_vm10 = vcmask 228352   ;;  %vm944_vm11 = vcmask 261120   ;;  %vm966_vm12 = vcmask 293888  }
   0x8   :  { %v2545_v20 = vld [vmem:[%s4169_s0 + $0x98] sm:$0xff]  ;;  %v2554_v21 = vld [vmem:[%s4169_s0 + $0xa0] sm:$0xff]  ;;  %v2559_v22 = vld [vmem:[%s4169_s0 + $0xa8] sm:$0xff]  ;;  %s2366_s17 = smov 64   ;;  %vm1965_vm13 = vcmask 326656   ;;  %vm1982_vm14 = vcmask 392192  }
   0x9   :  { %v2568_v23 = vld [vmem:[%s4169_s0 + $0xb0] sm:$0xff]  ;;  %v2573_v24 = vld [vmem:[%s4169_s0 + $0xb8] sm:$0xff]  ;;  %v2582_v25 = vld [vmem:[%s4169_s0 + $0xc0] sm:$0xff]  ;;  %vm1999_vm15 = vcmask 457728  }
   0xa   :  { %100 = vrot.lane.b32.xlu1 %v2442_v5, %s2355_s28  ;;  %98 = vrot.lane.b32.xlu0 %v2447_v6, %s2355_s28  ;;  %v2587_v26 = vld [vmem:[%s4169_s0 + $0xc8] sm:$0xff]  ;;  %v2596_v27 = vld [vmem:[%s4169_s0 + $0xd0] sm:$0xff] }
   0xb   :  { %v2601_v28 = vld [vmem:[%s4169_s0 + $0xd8] sm:$0xff]  ;;  %v2611_v30 = vld [vmem:[%s4169_s0 + $0xe0] sm:$0xff]  ;;  %v2616_v31 = vld [vmem:[%s4169_s0 + $0xe8] sm:$0xff] }
   0xc   :  { %v2629_v34 = vld [vmem:[%s4169_s0 + $0xf0] sm:$0xff]  ;;  %v2635_v37 = vld [vmem:[%s4169_s0 + $0xf8] sm:$0xff]  ;;  %s2357_s0 = smov 8  }
   0xe   :  { %104 = vrot.lane.b32.xlu1 %v2456_v7, %s2355_s28  ;;  %102 = vrot.lane.b32.xlu0 %v2461_v8, %s2355_s28 }
  0x12   :  { %108 = vrot.lane.b32.xlu1 %v2470_v9, %s2355_s28  ;;  %106 = vrot.lane.b32.xlu0 %v2475_v10, %s2355_s28 }
  0x16   :  { %112 = vrot.lane.b32.xlu1 %v2484_v11, %s2355_s28  ;;  %110 = vrot.lane.b32.xlu0 %v2489_v12, %s2355_s28 }
  0x1a   :  { %116 = vrot.lane.b32.xlu1 %v2498_v13, %s2355_s28  ;;  %114 = vrot.lane.b32.xlu0 %v2503_v14, %s2355_s28 }
  0x1e   :  { %118 = vrot.lane.b32.xlu0 %v2512_v15, %s2355_s28  ;;  %120 = vrot.lane.b32.xlu1 %v2517_v16, %s2355_s28 }
  0x22   :  { %122 = vrot.lane.b32.xlu0 %v2526_v17, %s2355_s28  ;;  %124 = vrot.lane.b32.xlu1 %v2531_v18, %s2355_s28 }
  0x26   :  { %126 = vrot.lane.b32.xlu0 %v2540_v19, %s2355_s28  ;;  %128 = vrot.lane.b32.xlu1 %v2545_v20, %s2355_s28 }
  0x2a   :  { %130 = vrot.lane.b32.xlu0 %v2554_v21, %s2355_s28  ;;  %132 = vrot.lane.b32.xlu1 %v2559_v22, %s2355_s28 }
  0x2e   :  { %134 = vrot.lane.b32.xlu0 %v2568_v23, %s2355_s28  ;;  %136 = vrot.lane.b32.xlu1 %v2573_v24, %s2355_s28 }
  0x32   :  { %138 = vrot.lane.b32.xlu0 %v2582_v25, %s2355_s28  ;;  %140 = vrot.lane.b32.xlu1 %v2587_v26, %s2355_s28 }
  0x36   :  { %142 = vrot.lane.b32.xlu0 %v2596_v27, %s2355_s28  ;;  %144 = vrot.lane.b32.xlu1 %v2601_v28, %s2355_s28 }
  0x3a   :  { %146 = vrot.lane.b32.xlu0 %v2611_v30, %s2355_s28  ;;  %148 = vrot.lane.b32.xlu1 %v2616_v31, %s2355_s28 }
  0x3e   :  { %150 = vrot.lane.b32.xlu0 %v2629_v34, %s2355_s28  ;;  %152 = vrot.lane.b32.xlu1 %v2635_v37, %s2355_s28  ;;  %s2358_s28 = smov 12  }
  0x42   :  { %458 = vrot.lane.b32.xlu0 %v2642_v38, %s2356_s22 }
  0x46   :  { %503 = vrot.lane.b32.xlu0 %v2648_v41, %s2357_s0 }
  0x74   :  { %v95_v42 = vpop.permute.xlu1 %94  ;;  %v91_v43 = vpop.permute.xlu0 %90 }
  0x75   :  { %v186_v44 = vmax.f32 %v2418_v1, %v91_v43  ;;  %v188_v47 = vmax.f32 %v2413_v0, %v95_v42 }
  0x78   :  { %v97_v45 = vpop.permute.xlu1 %96  ;;  %v93_v46 = vpop.permute.xlu0 %92 }
  0x79   :  { %v189_v48 = vmax.f32 %v2428_v3, %v97_v45  ;;  %v187_v49 = vmax.f32 %v2433_v4, %v93_v46 }
  0x7b   :  { %v219_v50 = vmax.f32 %v188_v47, %v189_v48  ;;  %v218_v51 = vmax.f32 %v186_v44, %v187_v49 }
  0x7c   :  { %v101_v52 = vpop.permute.xlu1 %100  ;;  %v99_v53 = vpop.permute.xlu0 %98 }
  0x7d   :  { %v253_v54 = vrot.slane %v219_v50, 7  ;;  %v252_v55 = vrot.slane %v218_v51, 7  ;;  %v191_v56 = vmax.f32 %v2442_v5, %v101_v52  ;;  %v190_v57 = vmax.f32 %v2447_v6, %v99_v53 }
  0x7f   :  { %v220_v58 = vmax.f32 %v190_v57, %v191_v56  ;;  %v2659_v59 = vsel %vm285_vm0, 0.0, %v253_v54  ;;  %v2664_v61 = vsel %vm285_vm0, 0.0, %v252_v55  ;;  %v304_v29 = vsel %vm285_vm0, %v252_v55, 0.0 }
  0x80   :  { %550 = vrot.lane.b32.xlu1 %v2659_v59, %s2358_s28  ;;  %v105_v60 = vpop.permute.xlu1 %104  ;;  %v103_v62 = vpop.permute.xlu0 %102  ;;  %548 = vrot.lane.b32.xlu0 %v2664_v61, %s2358_s28  ;;  %v354_v39 = vrot.slane %v2664_v61, 1  ;;  %v355_v40 = vrot.slane %v304_v29, 1  ;;  %v305_v42 = vsel %vm285_vm0, %v253_v54, 0.0  ;;  %v400_v50 = vrot.slane %v2664_v61, 2 }
  0x81   :  { %v254_v63 = vrot.slane %v220_v58, 7  ;;  %v193_v0 = vmax.f32 %v2456_v7, %v105_v60  ;;  %v192_v1 = vmax.f32 %v2461_v8, %v103_v62  ;;  %v358_v44 = vrot.slane %v305_v42, 1 }
  0x82   :  { %v401_v51 = vrot.slane %v304_v29, 2  ;;  %v403_v53 = vrot.slane %v2659_v59, 2  ;;  %v404_v54 = vrot.slane %v305_v42, 2  ;;  %v963_v29 = vld [vmem:[%s4170_s1 + $0x10] sm:$0xff] }
  0x83   :  { %v221_v3 = vmax.f32 %v192_v1, %v193_v0  ;;  %v2671_v4 = vsel %vm285_vm0, 0.0, %v254_v63  ;;  %v306_v45 = vsel %vm285_vm0, %v254_v63, 0.0  ;;  %v965_v1 = vld [vmem:[%s4170_s1 + $0x20] sm:$0xf] }
  0x84   :  { %692 = vrot.lane.b32.xlu1 %v2659_v59, %s2359_s23  ;;  %v109_v5 = vpop.permute.xlu1 %108  ;;  %v107_v6 = vpop.permute.xlu0 %106  ;;  %694 = vrot.lane.b32.xlu0 %v2671_v4, %s2359_s23  ;;  %v360_v48 = vrot.slane %v2671_v4, 1  ;;  %v361_v49 = vrot.slane %v306_v45, 1  ;;  %v402_v55 = vsel %vm396_vm2, %v400_v50, %v401_v51  ;;  %v405_v56 = vsel %vm396_vm2, %v403_v53, %v404_v54 }
  0x85   :  { %v255_v33 = vrot.slane %v221_v3, 7  ;;  %v195_v7 = vmax.f32 %v2470_v9, %v109_v5  ;;  %v194_v8 = vmax.f32 %v2475_v10, %v107_v6  ;;  %v356_v9 = vsel %vm350_vm1, %v354_v39, %v355_v40  ;;  %2263 = vmatprep.subr.msk.mxu0 %vm1015_vm3, %v965_v1  ;;  %v964_v3 = vld [vmem:[%s4170_s1 + $0x18] sm:$0xff]  ;;  %v961_v39 = vld [vmem:[%s4170_s1] sm:$0xff] }
  0x86   :  { %v357_v10 = vrot.slane %v2659_v59, 1  ;;  %v362_v52 = vsel %vm350_vm1, %v360_v48, %v361_v49  ;;  %v406_v57 = vrot.slane %v2671_v4, 2  ;;  %v407_v58 = vrot.slane %v306_v45, 2  ;;  %2264 = vmatpush3.msk.msra.mxu0 %vm1015_vm3, %v965_v1 }
  0x87   :  { %v2681_v35 = vsel %vm285_vm0, 0.0, %v255_v33  ;;  %v222_v36 = vmax.f32 %v194_v8, %v195_v7  ;;  %v307_v62 = vsel %vm285_vm0, %v255_v33, 0.0  ;;  %2265 = vmatprep.subr.mxu0 %v964_v3  ;;  %vm2016_vm3 = vcmask 523264  }
  0x88   :  { %552 = vrot.lane.b32.xlu1 %v2671_v4, %s2358_s28  ;;  %554 = vrot.lane.b32.xlu0 %v2681_v35, %s2358_s28  ;;  %v359_v47 = vsel %vm350_vm1, %v357_v10, %v358_v44  ;;  %v408_v60 = vsel %vm396_vm2, %v406_v57, %v407_v58  ;;  %v363_v63 = vrot.slane %v2681_v35, 1  ;;  %v364_v0 = vrot.slane %v307_v62, 1  ;;  %v111_v33 = vpop.permute.xlu0 %110  ;;  %v113_v40 = vpop.permute.xlu1 %112 }
  0x89   :  { %v256_v43 = vrot.slane %v222_v36, 7  ;;  %2266 = vmatpush3.msra.mxu0 %v964_v3  ;;  %v962_v36 = vld [vmem:[%s4170_s1 + $0x8] sm:$0xff]  ;;  %v410_v10 = vrot.slane %v307_v62, 2  ;;  %v197_v44 = vmax.f32 %v2484_v11, %v113_v40  ;;  %v196_v45 = vmax.f32 %v2489_v12, %v111_v33  ;;  %s2364_s1 = smov 48  }
  0x8a   :  { %v365_v5 = vsel %vm350_vm1, %v363_v63, %v364_v0  ;;  %2267 = vmatprep.subr.mxu0 %v963_v29 }
  0x8b   :  { %v2696_v46 = vsel %vm285_vm0, 0.0, %v256_v43  ;;  %v308_v6 = vsel %vm285_vm0, %v256_v43, 0.0  ;;  %2268 = vmatpush3.msra.mxu0 %v963_v29  ;;  %v223_v51 = vmax.f32 %v196_v45, %v197_v44 }
  0x8c   :  { %696 = vrot.lane.b32.xlu1 %v2681_v35, %s2359_s23  ;;  %596 = vrot.lane.b32.xlu0 %v356_v9, %s2360_s24  ;;  %v366_v7 = vrot.slane %v2696_v46, 1  ;;  %v367_v8 = vrot.slane %v308_v6, 1  ;;  %v115_v42 = vpop.permute.xlu0 %114  ;;  %v412_v48 = vrot.slane %v2696_v46, 2  ;;  %v413_v49 = vrot.slane %v308_v6, 2  ;;  %v117_v53 = vpop.permute.xlu1 %116 }
  0x8d   :  { %2269 = vmatprep.subr.mxu0 %v962_v36  ;;  %v257_v11 = vrot.slane %v223_v51, 7  ;;  %v199_v12 = vmax.f32 %v2498_v13, %v117_v53  ;;  %v198_v54 = vmax.f32 %v2503_v14, %v115_v42 }
  0x8e   :  { %2270 = vmatpush3.msra.mxu0 %v962_v36  ;;  %v368_v43 = vsel %vm350_vm1, %v366_v7, %v367_v8 }
  0x8f   :  { %2271 = vmatprep.subr.mxu0 %v961_v39  ;;  %v309_v57 = vsel %vm285_vm0, %v257_v11, 0.0  ;;  %v224_v58 = vmax.f32 %v198_v54, %v199_v12 }
  0x90   :  { %556 = vrot.lane.b32.xlu1 %v2696_v46, %s2358_s28  ;;  %598 = vrot.lane.b32.xlu0 %v359_v47, %s2360_s24  ;;  %v119_v50 = vpop.permute.xlu0 %118  ;;  %v370_v62 = vrot.slane %v309_v57, 1  ;;  %v416_v40 = vrot.slane %v309_v57, 2 }
  0x91   :  { %2272 = vmatpush3.msra.mxu0 %v961_v39  ;;  %v258_v63 = vrot.slane %v224_v58, 7  ;;  %v200_v42 = vmax.f32 %v2512_v15, %v119_v50 }
  0x93   :  { %v2774_v1 = vsel %vm285_vm0, 0.0, %v258_v63  ;;  %v310_v3 = vsel %vm285_vm0, %v258_v63, 0.0 }
  0x94   :  { %460 = vrot.lane.b32.xlu1 %v356_v9, %s2356_s22  ;;  %464 = vrot.lane.b32.xlu0 %v362_v52, %s2356_s22  ;;  %v409_v9 = vrot.slane %v2681_v35, 2  ;;  %v372_v33 = vrot.slane %v2774_v1, 1  ;;  %v373_v7 = vrot.slane %v310_v3, 1  ;;  %v418_v44 = vrot.slane %v2774_v1, 2 }
  0x95   :  { %v419_v45 = vrot.slane %v310_v3, 2 }
  0x96   :  { %v374_v8 = vsel %vm350_vm1, %v372_v33, %v373_v7 }
  0x97   :  { %v420_v15 = vsel %vm396_vm2, %v418_v44, %v419_v45 }
  0x98   :  { %505 = vrot.lane.b32.xlu1 %v402_v55, %s2357_s0  ;;  %646 = vrot.lane.b32.xlu0 %v405_v56, %s2361_s25 }
  0x9c   :  { %462 = vrot.lane.b32.xlu1 %v359_v47, %s2356_s22  ;;  %509 = vrot.lane.b32.xlu0 %v408_v60, %s2357_s0 }
  0xa0   :  { %644 = vrot.lane.b32.xlu1 %v402_v55, %s2361_s25  ;;  %739 = vrot.lane.b32.xlu0 %v362_v52, %s2362_s26  ;;  %v123_v55 = vpop.permute.xlu0 %122 }
  0xa4   :  { %507 = vrot.lane.b32.xlu1 %v405_v56, %s2357_s0  ;;  %466 = vrot.lane.b32.xlu0 %v365_v5, %s2356_s22  ;;  %v2767_v13 = vpop.permute.xlu0 %126 }
  0xa5   :  { %v204_v7 = vmax.f32 %v2540_v19, %v2767_v13 }
  0xa8   :  { %737 = vrot.lane.b32.xlu1 %v359_v47, %s2362_s26  ;;  %648 = vrot.lane.b32.xlu0 %v408_v60, %s2361_s25  ;;  %v411_v47 = vsel %vm396_vm2, %v409_v9, %v410_v10  ;;  %v2777_v6 = vpop.permute.xlu0 %130 }
  0xac   :  { %600 = vrot.lane.b32.xlu1 %v362_v52, %s2360_s24  ;;  %468 = vrot.lane.b32.xlu0 %v368_v43, %s2356_s22  ;;  %v414_v52 = vsel %vm396_vm2, %v412_v48, %v413_v49 }
  0xb0   :  { %782 = vrot.lane.b32.xlu1 %v405_v56, %s2363_s15  ;;  %650 = vrot.lane.b32.xlu0 %v411_v47, %s2361_s25  ;;  %v2761_v56 = vsel %vm285_vm0, 0.0, %v257_v11 }
  0xb1   :  { %v369_v14 = vrot.slane %v2761_v56, 1  ;;  %v415_v39 = vrot.slane %v2761_v56, 2 }
  0xb3   :  { %v371_v0 = vsel %vm350_vm1, %v369_v14, %v370_v62  ;;  %v417_v10 = vsel %vm396_vm2, %v415_v39, %v416_v40 }
  0xb4   :  { %602 = vrot.lane.b32.xlu1 %v365_v5, %s2360_s24  ;;  %513 = vrot.lane.b32.xlu0 %v414_v52, %s2357_s0 }
  0xb8   :  { %784 = vrot.lane.b32.xlu1 %v408_v60, %s2363_s15  ;;  %698 = vrot.lane.b32.xlu0 %v2696_v46, %s2359_s23  ;;  %v121_v60 = vpop.permute.xlu1 %120 }
  0xb9   :  { %v201_v9 = vmax.f32 %v2517_v16, %v121_v60 }
  0xbb   :  { %v225_v48 = vmax.f32 %v200_v42, %v201_v9 }
  0xbc   :  { %511 = vrot.lane.b32.xlu1 %v411_v47, %s2357_s0  ;;  %558 = vrot.lane.b32.xlu0 %v2761_v56, %s2358_s28  ;;  %v125_v29 = vpop.permute.xlu1 %124 }
  0xbd   :  { %v259_v50 = vrot.slane %v225_v48, 7  ;;  %v203_v53 = vmax.f32 %v2531_v18, %v125_v29 }
  0xbf   :  { %v294_v11 = vsel %vm285_vm0, 0.0, %v259_v50  ;;  %v311_v54 = vsel %vm285_vm0, %v259_v50, 0.0  ;;  %v206_v50 = vmax.f32 %v2554_v21, %v2777_v6 }
  0xc0   :  { %741 = vrot.lane.b32.xlu1 %v365_v5, %s2362_s26  ;;  %743 = vrot.lane.b32.xlu0 %v368_v43, %s2362_s26  ;;  %v2784_v5 = vpop.permute.xlu0 %134  ;;  %v2787_v36 = vpop.permute.xlu1 %128  ;;  %v446_v58 = vrot.slane %v294_v11, 1  ;;  %v447_v14 = vrot.slane %v311_v54, 1  ;;  %v452_v29 = vrot.slane %v294_v11, 2  ;;  %v453_v33 = vrot.slane %v311_v54, 2 }
  0xc1   :  { %v205_v40 = vmax.f32 %v2545_v20, %v2787_v36 }
  0xc2   :  { %v448_v62 = vsel %vm350_vm1, %v446_v58, %v447_v14  ;;  %v454_v42 = vsel %vm396_vm2, %v452_v29, %v453_v33 }
  0xc3   :  { %v227_v13 = vmax.f32 %v204_v7, %v205_v40 }
  0xc4   :  { %604 = vrot.lane.b32.xlu1 %v368_v43, %s2360_s24  ;;  %470 = vrot.lane.b32.xlu0 %v371_v0, %s2356_s22  ;;  %v2793_v43 = vpop.permute.xlu0 %138 }
  0xc8   :  { %786 = vrot.lane.b32.xlu1 %v411_v47, %s2363_s15  ;;  %652 = vrot.lane.b32.xlu0 %v414_v52, %s2361_s25  ;;  %v2799_v47 = vpop.permute.xlu1 %132  ;;  %v2805_v49 = vpop.permute.xlu0 %142 }
  0xcc   :  { %606 = vrot.lane.b32.xlu1 %v371_v0, %s2360_s24  ;;  %472 = vrot.lane.b32.xlu0 %v374_v8, %s2356_s22  ;;  %v2807_v16 = vpop.permute.xlu1 %136  ;;  %v2813_v51 = vpop.permute.xlu0 %146 }
  0xd0   :  { %788 = vrot.lane.b32.xlu1 %v414_v52, %s2363_s15  ;;  %654 = vrot.lane.b32.xlu0 %v417_v10, %s2361_s25  ;;  %v202_v52 = vmax.f32 %v2526_v17, %v123_v55  ;;  %v2820_v12 = vpop.permute.xlu1 %140  ;;  %v2826_v17 = vpop.permute.xlu0 %150 }
  0xd2   :  { %v226_v57 = vmax.f32 %v202_v52, %v203_v53  ;;  %v207_v52 = vmax.f32 %v2559_v22, %v2799_v47 }
  0xd4   :  { %515 = vrot.lane.b32.xlu1 %v417_v10, %s2357_s0  ;;  %517 = vrot.lane.b32.xlu0 %v420_v15, %s2357_s0  ;;  %v2828_v18 = vpop.permute.xlu1 %144  ;;  %v260_v55 = vrot.slane %v226_v57, 7  ;;  %v2833_v60 = vpop.permute.xlu0 %458  ;;  %v228_v58 = vmax.f32 %v206_v50, %v207_v52 }
  0xd6   :  { %v2836_v63 = vsel %vm285_vm0, 0.0, %v260_v55  ;;  %v262_v14 = vrot.slane %v228_v58, 7 }
  0xd7   :  { %v421_v9 = vrot.slane %v2836_v63, 2 }
  0xd8   :  { %700 = vrot.lane.b32.xlu1 %v2761_v56, %s2359_s23  ;;  %702 = vrot.lane.b32.xlu0 %v2774_v1, %s2359_s23  ;;  %v2839_v3 = vpop.permute.xlu1 %148  ;;  %v2852_v44 = vpop.permute.xlu0 %503  ;;  %v2898_v33 = vsel %vm285_vm0, 0.0, %v262_v14  ;;  %v314_v7 = vsel %vm285_vm0, %v262_v14, 0.0 }
  0xd9   :  { %v381_v40 = vrot.slane %v2898_v33, 1  ;;  %v428_v58 = vrot.slane %v314_v7, 2 }
  0xdc   :  { %560 = vrot.lane.b32.xlu1 %v2774_v1, %s2358_s28  ;;  %562 = vrot.lane.b32.xlu0 %v294_v11, %s2358_s28  ;;  %v2854_v45 = vpop.permute.xlu1 %152 }
  0xe0   :  { %745 = vrot.lane.b32.xlu1 %v371_v0, %s2362_s26  ;;  %747 = vrot.lane.b32.xlu0 %v374_v8, %s2362_s26  ;;  %v312_v0 = vsel %vm285_vm0, %v260_v55, 0.0 }
  0xe1   :  { %v376_v39 = vrot.slane %v312_v0, 1 }
  0xe4   :  { %608 = vrot.lane.b32.xlu1 %v374_v8, %s2360_s24  ;;  %610 = vrot.lane.b32.xlu0 %v448_v62, %s2360_s24  ;;  %v375_v8 = vrot.slane %v2836_v63, 1 }
  0xe6   :  { %v377_v19 = vsel %vm350_vm1, %v375_v8, %v376_v39  ;;  %v382_v39 = vrot.slane %v314_v7, 1 }
  0xe8   :  { %790 = vrot.lane.b32.xlu1 %v417_v10, %s2363_s15  ;;  %792 = vrot.lane.b32.xlu0 %v420_v15, %s2363_s15  ;;  %v422_v10 = vrot.slane %v312_v0, 2 }
  0xea   :  { %v423_v48 = vsel %vm396_vm2, %v421_v9, %v422_v10 }
  0xec   :  { %656 = vrot.lane.b32.xlu1 %v420_v15, %s2361_s25  ;;  %658 = vrot.lane.b32.xlu0 %v454_v42, %s2361_s25  ;;  %v261_v15 = vrot.slane %v227_v13, 7  ;;  %v383_v13 = vsel %vm350_vm1, %v381_v40, %v382_v39  ;;  %v210_v39 = vmax.f32 %v2582_v25, %v2793_v43  ;;  %v211_v40 = vmax.f32 %v2587_v26, %v2820_v12 }
  0xee   :  { %v2878_v57 = vsel %vm285_vm0, 0.0, %v261_v15  ;;  %v230_v43 = vmax.f32 %v210_v39, %v211_v40 }
  0xef   :  { %v378_v47 = vrot.slane %v2878_v57, 1 }
  0xf0   :  { %474 = vrot.lane.b32.xlu1 %v377_v19, %s2356_s22  ;;  %519 = vrot.lane.b32.xlu0 %v423_v48, %s2357_s0 }
  0xf2   :  { %v2860_v20 = vpop.permute.xlu1 %550  ;;  %v2862_v36 = vpop.permute.xlu0 %548 }
  0xf4   :  { %704 = vrot.lane.b32.xlu1 %v294_v11, %s2359_s23  ;;  %706 = vrot.lane.b32.xlu0 %v2619_v32, %s2359_s23  ;;  %v313_v11 = vsel %vm285_vm0, %v261_v15, 0.0  ;;  %v424_v15 = vrot.slane %v2878_v57, 2 }
  0xf5   :  { %v379_v6 = vrot.slane %v313_v11, 1 }
  0xf6   :  { %v2871_v53 = vpop.permute.xlu1 %692  ;;  %v2873_v54 = vpop.permute.xlu0 %694 }
  0xf7   :  { %v380_v29 = vsel %vm350_vm1, %v378_v47, %v379_v6  ;;  %v427_v6 = vrot.slane %v2898_v33, 2 }
  0xf8   :  { %564 = vrot.lane.b32.xlu1 %v2836_v63, %s2358_s28  ;;  %566 = vrot.lane.b32.xlu0 %v2878_v57, %s2358_s28 }
  0xfa   :  { %v2883_v21 = vpop.permute.xlu1 %552  ;;  %v2885_v22 = vpop.permute.xlu0 %554 }
  0xfc   :  { %749 = vrot.lane.b32.xlu1 %v448_v62, %s2362_s26  ;;  %751 = vrot.lane.b32.xlu0 %v2642_v38, %s2362_s26 }
  0xfe   :  { %v2891_v55 = vpop.permute.xlu1 %696  ;;  %v2893_v0 = vpop.permute.xlu0 %596 }
 0x100   :  { %612 = vrot.lane.b32.xlu1 %v377_v19, %s2360_s24  ;;  %476 = vrot.lane.b32.xlu0 %v380_v29, %s2356_s22  ;;  %v425_v19 = vrot.slane %v313_v11, 2 }
 0x102   :  { %v2902_v62 = vpop.permute.xlu1 %556  ;;  %v2904_v8 = vpop.permute.xlu0 %598  ;;  %v426_v11 = vsel %vm396_vm2, %v424_v15, %v425_v19  ;;  %v828_v19 = vsel %vm827_vm4, %v2619_v32, %v2833_v60 }
 0x103   :  { %v2961_v12 = vsel %vm843_vm5, %v828_v19, %v2852_v44 }
 0x104   :  { %794 = vrot.lane.b32.xlu1 %v454_v42, %s2363_s15  ;;  %660 = vrot.lane.b32.xlu0 %v423_v48, %s2361_s25  ;;  %v208_v42 = vmax.f32 %v2568_v23, %v2784_v5  ;;  %v209_v48 = vmax.f32 %v2573_v24, %v2807_v16  ;;  %v2932_v5 = vsel %vm396_vm2, %v427_v6, %v428_v58 }
 0x105   :  { %v860_v6 = vsel %vm859_vm6, %v2961_v12, %v2862_v36 }
 0x106   :  { %v461_v9 = vpop.permute.xlu1 %460  ;;  %v2909_v10 = vpop.permute.xlu0 %464  ;;  %v229_v23 = vmax.f32 %v208_v42, %v209_v48  ;;  %v877_v39 = vsel %vm876_vm7, %v860_v6, %v2893_v0 }
 0x108   :  { %614 = vrot.lane.b32.xlu1 %v380_v29, %s2360_s24  ;;  %478 = vrot.lane.b32.xlu0 %v383_v13, %s2356_s22  ;;  %v263_v7 = vrot.slane %v229_v23, 7  ;;  %v829_v23 = vsel %vm827_vm4, %v2664_v61, %v461_v9 }
 0x10a   :  { %v506_v50 = vpop.permute.xlu1 %505  ;;  %v2917_v52 = vpop.permute.xlu0 %646  ;;  %v2956_v25 = vsel %vm285_vm0, 0.0, %v263_v7  ;;  %v315_v26 = vsel %vm285_vm0, %v263_v7, 0.0  ;;  %v264_v7 = vrot.slane %v230_v43, 7 }
 0x10b   :  { %v385_v48 = vrot.slane %v315_v26, 1  ;;  %v384_v44 = vrot.slane %v2956_v25, 1  ;;  %v845_v40 = vsel %vm843_vm5, %v829_v23, %v506_v50 }
 0x10c   :  { %796 = vrot.lane.b32.xlu1 %v2648_v41, %s2363_s15  ;;  %662 = vrot.lane.b32.xlu0 %v426_v11, %s2361_s25  ;;  %v861_v61 = vsel %vm859_vm6, %v845_v40, %v2860_v20  ;;  %v2988_v0 = vsel %vm285_vm0, 0.0, %v264_v7  ;;  %v316_v9 = vsel %vm285_vm0, %v264_v7, 0.0 }
 0x10d   :  { %v388_v6 = vrot.slane %v316_v9, 1 }
 0x10e   :  { %v2926_v47 = vpop.permute.xlu1 %462  ;;  %v2928_v14 = vpop.permute.xlu0 %509 }
 0x110   :  { %521 = vrot.lane.b32.xlu1 %v426_v11, %s2357_s0  ;;  %523 = vrot.lane.b32.xlu0 %v2932_v5, %s2357_s0 }
 0x112   :  { %v645_v24 = vpop.permute.xlu1 %644  ;;  %v2936_v16 = vpop.permute.xlu0 %739 }
 0x113   :  { %v894_v19 = vsel %vm893_vm8, %v877_v39, %v645_v24 }
 0x114   :  { %708 = vrot.lane.b32.xlu1 %v2878_v57, %s2359_s23  ;;  %710 = vrot.lane.b32.xlu0 %v2898_v33, %s2359_s23  ;;  %v911_v50 = vsel %vm910_vm9, %v894_v19, %v2871_v53  ;;  %v387_v53 = vrot.slane %v2988_v0, 1  ;;  %v212_v19 = vmax.f32 %v2596_v27, %v2805_v49  ;;  %v830_v27 = vsel %vm827_vm4, %v2659_v59, %v2926_v47 }
 0x116   :  { %v2949_v15 = vpop.permute.xlu1 %507  ;;  %v2951_v42 = vpop.permute.xlu0 %466  ;;  %v389_v7 = vsel %vm350_vm1, %v387_v53, %v388_v6  ;;  %v215_v6 = vmax.f32 %v2616_v31, %v2839_v3 }
 0x118   :  { %568 = vrot.lane.b32.xlu1 %v2898_v33, %s2358_s28  ;;  %570 = vrot.lane.b32.xlu0 %v2956_v25, %s2358_s28 }
 0x11a   :  { %v738_v60 = vpop.permute.xlu1 %737  ;;  %v2965_v58 = vpop.permute.xlu0 %648 }
 0x11b   :  { %v928_v20 = vsel %vm927_vm10, %v911_v50, %v738_v60  ;;  %v434_v50 = vrot.slane %v316_v9, 2 }
 0x11c   :  { %753 = vrot.lane.b32.xlu1 %v380_v29, %s2362_s26  ;;  %755 = vrot.lane.b32.xlu0 %v383_v13, %s2362_s26  ;;  %v2985_v29 = vsel %vm350_vm1, %v384_v44, %v385_v48 }
 0x11e   :  { %v601_v2 = vpop.permute.xlu1 %600  ;;  %v2979_v36 = vpop.permute.xlu0 %468 }
 0x120   :  { %616 = vrot.lane.b32.xlu1 %v383_v13, %s2360_s24  ;;  %480 = vrot.lane.b32.xlu0 %v2985_v29, %s2356_s22  ;;  %v878_v13 = vsel %vm876_vm7, %v861_v61, %v2904_v8  ;;  %v431_v8 = vrot.slane %v315_v26, 2 }
 0x121   :  { %v895_v60 = vsel %vm893_vm8, %v878_v13, %v2917_v52 }
 0x122   :  { %v783_v24 = vpop.permute.xlu1 %782  ;;  %v2998_v43 = vpop.permute.xlu0 %650  ;;  %v912_v39 = vsel %vm910_vm9, %v895_v60, %v2873_v54  ;;  %v831_v60 = vsel %vm827_vm4, %v2671_v4, %v2909_v10 }
 0x123   :  { %v945_v48 = vsel %vm944_vm11, %v928_v20, %v783_v24  ;;  %v929_v40 = vsel %vm927_vm10, %v912_v39, %v2936_v16  ;;  %v213_v20 = vmax.f32 %v2601_v28, %v2828_v18  ;;  %v433_v16 = vrot.slane %v2988_v0, 2 }
 0x124   :  { %798 = vrot.lane.b32.xlu1 %v426_v11, %s2363_s15  ;;  %2273 = vmatprep.mubr.msk.f32.mxu0 %vm966_vm12, %v945_v48  ;;  %v430_v11 = vrot.slane %v2956_v25, 2  ;;  %v846_v28 = vsel %vm843_vm5, %v830_v27, %v2949_v15  ;;  %v214_v15 = vmax.f32 %v2611_v30, %v2813_v51  ;;  %v847_v3 = vsel %vm843_vm5, %v831_v60, %v2928_v14 }
 0x125   :  { %664 = vrot.lane.b32.xlu0 %v2932_v5, %s2361_s25  ;;  %v3041_v9 = vsel %vm396_vm2, %v433_v16, %v434_v50  ;;  %v862_v24 = vsel %vm859_vm6, %v846_v28, %v2883_v21 }
 0x126   :  { %v603_v23 = vpop.permute.xlu1 %602  ;;  %v3008_v44 = vpop.permute.xlu0 %513  ;;  %v432_v54 = vsel %vm396_vm2, %v430_v11, %v431_v8  ;;  %v879_v47 = vsel %vm876_vm7, %v862_v24, %v601_v2  ;;  %v232_v51 = vmax.f32 %v214_v15, %v215_v6 }
 0x127   :  { %v896_v21 = vsel %vm893_vm8, %v879_v47, %v2965_v58 }
 0x128   :  { %618 = vrot.lane.b32.xlu1 %v2985_v29, %s2360_s24  ;;  %v913_v58 = vsel %vm910_vm9, %v896_v21, %v2891_v55  ;;  %v266_v14 = vrot.slane %v232_v51, 7  ;;  %v217_v21 = vmax.f32 %v2635_v37, %v2854_v45  ;;  %v832_v37 = vsel %vm827_vm4, %v2681_v35, %v2951_v42 }
 0x129   :  { %482 = vrot.lane.b32.xlu0 %v389_v7, %s2356_s22 }
 0x12a   :  { %v785_v52 = vpop.permute.xlu1 %784  ;;  %v699_v61 = vpop.permute.xlu0 %698 }
 0x12b   :  { %v946_v26 = vsel %vm944_vm11, %v929_v40, %v785_v52  ;;  %v863_v40 = vsel %vm859_vm6, %v847_v3, %v2885_v22 }
 0x12c   :  { %800 = vrot.lane.b32.xlu1 %v2932_v5, %s2363_s15  ;;  %2274 = vmatmul.mubr.msk.f32.vlgmr.msra.gmra.mxu0 %vm966_vm12, %v946_v26  ;;  %v231_v5 = vmax.f32 %v212_v19, %v213_v20  ;;  %v880_v52 = vsel %vm876_vm7, %v863_v40, %v603_v23  ;;  %v318_v20 = vsel %vm285_vm0, %v266_v14, 0.0 }
 0x12d   :  { %666 = vrot.lane.b32.xlu0 %v432_v54, %s2361_s25  ;;  %v897_v50 = vsel %vm893_vm8, %v880_v52, %v2998_v43  ;;  %v440_v6 = vrot.slane %v318_v20, 2 }
 0x12e   :  { %v3033_v49 = vpop.permute.xlu1 %511  ;;  %v3037_v18 = vpop.permute.xlu0 %558  ;;  %v265_v48 = vrot.slane %v231_v5, 7  ;;  %v914_v23 = vsel %vm910_vm9, %v897_v50, %v699_v61 }
 0x12f   :  { %v848_v45 = vsel %vm843_vm5, %v832_v37, %v3033_v49 }
 0x130   :  { %525 = vrot.lane.b32.xlu1 %v432_v54, %s2357_s0  ;;  %v3068_v30 = vsel %vm285_vm0, 0.0, %v265_v48  ;;  %v317_v31 = vsel %vm285_vm0, %v265_v48, 0.0  ;;  %v216_v48 = vmax.f32 %v2629_v34, %v2826_v17  ;;  %v864_v35 = vsel %vm859_vm6, %v848_v45, %v2902_v62 }
 0x131   :  { %527 = vrot.lane.b32.xlu0 %v3041_v9, %s2357_s0  ;;  %v391_v39 = vrot.slane %v317_v31, 1  ;;  %v390_v55 = vrot.slane %v3068_v30, 1 }
 0x132   :  { %v742_v59 = vpop.permute.xlu1 %741  ;;  %v744_v13 = vpop.permute.xlu0 %743 }
 0x133   :  { %v930_v4 = vsel %vm927_vm10, %v913_v58, %v742_v59  ;;  %v3095_v22 = vsel %vm350_vm1, %v390_v55, %v391_v39  ;;  %v931_v16 = vsel %vm927_vm10, %v914_v23, %v744_v13  ;;  %v437_v59 = vrot.slane %v317_v31, 2 }
 0x134   :  { %712 = vrot.lane.b32.xlu1 %v2956_v25, %s2359_s23  ;;  %v436_v13 = vrot.slane %v3068_v30, 2  ;;  %v233_v58 = vmax.f32 %v216_v48, %v217_v21 }
 0x135   :  { %714 = vrot.lane.b32.xlu0 %v2988_v0, %s2359_s23 }
 0x136   :  { %v3058_v53 = vpop.permute.xlu1 %604  ;;  %v3060_v2 = vpop.permute.xlu0 %470  ;;  %v438_v60 = vsel %vm396_vm2, %v436_v13, %v437_v59 }
 0x137   :  { %v881_v39 = vsel %vm876_vm7, %v864_v35, %v3058_v53 }
 0x138   :  { %572 = vrot.lane.b32.xlu1 %v2988_v0, %s2358_s28 }
 0x139   :  { %574 = vrot.lane.b32.xlu0 %v3068_v30, %s2358_s28 }
 0x13a   :  { %v787_v10 = vpop.permute.xlu1 %786  ;;  %v3079_v11 = vpop.permute.xlu0 %652 }
 0x13b   :  { %v947_v8 = vsel %vm944_vm11, %v930_v4, %v787_v10  ;;  %v267_v4 = vrot.slane %v233_v58, 7  ;;  %v833_v10 = vsel %vm827_vm4, %v2696_v46, %v2979_v36  ;;  %v898_v46 = vsel %vm893_vm8, %v881_v39, %v3079_v11 }
 0x13c   :  { %757 = vrot.lane.b32.xlu1 %v2985_v29, %s2362_s26  ;;  %2276 = vmatprep.mubr.msk.f32.mxu0 %vm966_vm12, %v947_v8  ;;  %v3098_v29 = vsel %vm285_vm0, 0.0, %v266_v14  ;;  %v849_v8 = vsel %vm843_vm5, %v833_v10, %v3008_v44 }
 0x13d   :  { %759 = vrot.lane.b32.xlu0 %v389_v7, %s2362_s26  ;;  %v393_v5 = vrot.slane %v3098_v29, 1  ;;  %v439_v31 = vrot.slane %v3098_v29, 2  ;;  %v865_v49 = vsel %vm859_vm6, %v849_v8, %v3037_v18  ;;  %v302_v44 = vsel %vm285_vm0, 0.0, %v267_v4 }
 0x13e   :  { %v607_v19 = vpop.permute.xlu1 %606  ;;  %v3089_v26 = vpop.permute.xlu0 %472  ;;  %v319_v62 = vsel %vm285_vm0, %v267_v4, 0.0  ;;  %v449_v23 = vrot.slane %v302_v44, 1  ;;  %v455_v13 = vrot.slane %v302_v44, 2 }
 0x13f   :  { %v441_v34 = vsel %vm396_vm2, %v439_v31, %v440_v6  ;;  %v882_v36 = vsel %vm876_vm7, %v865_v49, %v607_v19  ;;  %v456_v59 = vrot.slane %v319_v62, 2 }
 0x140   :  { %620 = vrot.lane.b32.xlu1 %v389_v7, %s2360_s24  ;;  %v394_v7 = vrot.slane %v318_v20, 1  ;;  %v450_v20 = vrot.slane %v319_v62, 1 }
 0x141   :  { %484 = vrot.lane.b32.xlu0 %v3095_v22, %s2356_s22 }
 0x142   :  { %v789_v27 = vpop.permute.xlu1 %788  ;;  %v655_v28 = vpop.permute.xlu0 %654  ;;  %v395_v47 = vsel %vm350_vm1, %v393_v5, %v394_v7 }
 0x143   :  { %v948_v43 = vsel %vm944_vm11, %v931_v16, %v789_v27  ;;  %v899_v55 = vsel %vm893_vm8, %v882_v36, %v655_v28  ;;  %v451_v28 = vsel %vm350_vm1, %v449_v23, %v450_v20 }
 0x144   :  { %802 = vrot.lane.b32.xlu1 %v432_v54, %s2363_s15  ;;  %2277 = vmatmul.mubr.msk.f32.gmra.mxu0 %vm966_vm12, %v948_v43 }
 0x145   :  { %668 = vrot.lane.b32.xlu0 %v3041_v9, %s2361_s25 }
 0x146   :  { %v3111_v61 = vpop.permute.xlu1 %515  ;;  %v3113_v24 = vpop.permute.xlu0 %517 }
 0x148   :  { %622 = vrot.lane.b32.xlu1 %v3095_v22, %s2360_s24 }
 0x149   :  { %486 = vrot.lane.b32.xlu0 %v395_v47, %s2356_s22 }
 0x14a   :  { %v701_v54 = vpop.permute.xlu1 %700  ;;  %v703_v15 = vpop.permute.xlu0 %702 }
 0x14b   :  { %v915_v18 = vsel %vm910_vm9, %v898_v46, %v701_v54  ;;  %v916_v53 = vsel %vm910_vm9, %v899_v55, %v703_v15  ;;  %v457_v15 = vsel %vm396_vm2, %v455_v13, %v456_v59 }
 0x14c   :  { %804 = vrot.lane.b32.xlu1 %v3041_v9, %s2363_s15 }
 0x14d   :  { %670 = vrot.lane.b32.xlu0 %v438_v60, %s2361_s25 }
 0x14e   :  { %v3129_v51 = vpop.permute.xlu1 %560  ;;  %v3131_v3 = vpop.permute.xlu0 %562 }
 0x150   :  { %529 = vrot.lane.b32.xlu1 %v438_v60, %s2357_s0 }
 0x151   :  { %531 = vrot.lane.b32.xlu0 %v441_v34, %s2357_s0 }
 0x152   :  { %v746_v17 = vpop.permute.xlu1 %745  ;;  %v748_v9 = vpop.permute.xlu0 %747 }
 0x153   :  { %v932_v14 = vsel %vm927_vm10, %v915_v18, %v746_v17  ;;  %v933_v52 = vsel %vm927_vm10, %v916_v53, %v748_v9 }
 0x154   :  { %716 = vrot.lane.b32.xlu1 %v3068_v30, %s2359_s23 }
 0x155   :  { %718 = vrot.lane.b32.xlu0 %v3098_v29, %s2359_s23 }
 0x156   :  { %v609_v42 = vpop.permute.xlu1 %608  ;;  %v3156_v40 = vpop.permute.xlu0 %610 }
 0x158   :  { %576 = vrot.lane.b32.xlu1 %v3098_v29, %s2358_s28 }
 0x159   :  { %578 = vrot.lane.b32.xlu0 %v302_v44, %s2358_s28 }
 0x15a   :  { %v791_v11 = vpop.permute.xlu1 %790  ;;  %v793_v50 = vpop.permute.xlu0 %792 }
 0x15b   :  { %v949_v19 = vsel %vm944_vm11, %v932_v14, %v791_v11  ;;  %v950_v16 = vsel %vm944_vm11, %v933_v52, %v793_v50 }
 0x15c   :  { %761 = vrot.lane.b32.xlu1 %v3095_v22, %s2362_s26  ;;  %2279 = vmatprep.mubr.msk.f32.mxu0 %vm966_vm12, %v949_v19 }
 0x15d   :  { %763 = vrot.lane.b32.xlu0 %v395_v47, %s2362_s26  ;;  %2280 = vmatmul.mubr.msk.f32.gmra.mxu0 %vm966_vm12, %v950_v16 }
 0x15e   :  { %v657_v27 = vpop.permute.xlu1 %656  ;;  %v659_v43 = vpop.permute.xlu0 %658 }
 0x160   :  { %624 = vrot.lane.b32.xlu1 %v395_v47, %s2360_s24 }
 0x161   :  { %626 = vrot.lane.b32.xlu0 %v451_v28, %s2360_s24 }
 0x162   :  { %v475_v7 = vpop.permute.xlu1 %474  ;;  %v3181_v5 = vpop.permute.xlu0 %519 }
 0x163   :  { %v836_v16 = vsel %vm827_vm4, %v2836_v63, %v475_v7 }
 0x164   :  { %806 = vrot.lane.b32.xlu1 %v438_v60, %s2363_s15  ;;  %v834_v60 = vsel %vm827_vm4, %v2761_v56, %v3060_v2 }
 0x165   :  { %808 = vrot.lane.b32.xlu0 %v441_v34, %s2363_s15  ;;  %v850_v31 = vsel %vm843_vm5, %v834_v60, %v3111_v61 }
 0x166   :  { %v705_v22 = vpop.permute.xlu1 %704  ;;  %v3185_v54 = vpop.permute.xlu0 %706  ;;  %v866_v58 = vsel %vm859_vm6, %v850_v31, %v3129_v51  ;;  %v835_v51 = vsel %vm827_vm4, %v2774_v1, %v3089_v26 }
 0x167   :  { %v883_v37 = vsel %vm876_vm7, %v866_v58, %v609_v42  ;;  %v851_v10 = vsel %vm843_vm5, %v835_v51, %v3113_v24 }
 0x168   :  { %672 = vrot.lane.b32.xlu1 %v441_v34, %s2361_s25  ;;  %v900_v45 = vsel %vm893_vm8, %v883_v37, %v657_v27  ;;  %v867_v8 = vsel %vm859_vm6, %v851_v10, %v3131_v3 }
 0x169   :  { %720 = vrot.lane.b32.xlu0 %v302_v44, %s2359_s23  ;;  %v917_v56 = vsel %vm910_vm9, %v900_v45, %v705_v22  ;;  %v884_v42 = vsel %vm876_vm7, %v867_v8, %v3156_v40 }
 0x16a   :  { %v565_v47 = vpop.permute.xlu1 %564  ;;  %v567_v48 = vpop.permute.xlu0 %566  ;;  %v901_v39 = vsel %vm893_vm8, %v884_v42, %v659_v43 }
 0x16b   :  { %v918_v1 = vsel %vm910_vm9, %v901_v39, %v3185_v54  ;;  %v868_v11 = vsel %vm859_vm6, %v2961_v12, %v565_v47  ;;  %v852_v12 = vsel %vm843_vm5, %v836_v16, %v3181_v5 }
 0x16c   :  { %674 = vrot.lane.b32.xlu1 %v457_v15, %s2361_s25  ;;  %v869_v59 = vsel %vm859_vm6, %v852_v12, %v567_v48 }
 0x16d   :  { %810 = vrot.lane.b32.xlu0 %v457_v15, %s2363_s15 }
 0x16e   :  { %v750_v6 = vpop.permute.xlu1 %749  ;;  %v3192_v21 = vpop.permute.xlu0 %751 }
 0x16f   :  { %v934_v2 = vsel %vm927_vm10, %v917_v56, %v750_v6  ;;  %v935_v26 = vsel %vm927_vm10, %v918_v1, %v3192_v21 }
 0x170   :  { %765 = vrot.lane.b32.xlu1 %v451_v28, %s2362_s26 }
 0x171   :  { %1782 = vrot.lane.b32.xlu0 %v2619_v32, %s2364_s1 }
 0x172   :  { %v613_v34 = vpop.permute.xlu1 %612  ;;  %v3203_v17 = vpop.permute.xlu0 %476 }
 0x173   :  { %v885_v19 = vsel %vm876_vm7, %v868_v11, %v613_v34 }
 0x174   :  { %1534 = vrot.lane.b32.xlu1 %v2642_v38, %s2357_s0 }
 0x175   :  { %1827 = vrot.lane.b32.xlu0 %v2642_v38, %s2365_s16 }
 0x176   :  { %v795_v9 = vpop.permute.xlu1 %794  ;;  %v661_v4 = vpop.permute.xlu0 %660 }
 0x177   :  { %v951_v61 = vsel %vm944_vm11, %v934_v2, %v795_v9  ;;  %v902_v20 = vsel %vm893_vm8, %v885_v19, %v661_v4 }
 0x178   :  { %2282 = vmatprep.mubr.msk.f32.mxu0 %vm966_vm12, %v951_v61  ;;  %1579 = vrot.lane.b32.xlu1 %v2648_v41, %s2360_s24  ;;  %v837_v61 = vsel %vm827_vm4, %v2878_v57, %v3203_v17 }
 0x179   :  { %1872 = vrot.lane.b32.xlu0 %v2648_v41, %s2366_s17 }
 0x17a   :  { %v615_v35 = vpop.permute.xlu1 %614  ;;  %v479_v49 = vpop.permute.xlu0 %478 }
 0x17b   :  { %v886_v47 = vsel %vm876_vm7, %v869_v59, %v615_v35  ;;  %v838_v57 = vsel %vm827_vm4, %v2898_v33, %v479_v49 }
 0x17e   :  { %v3228_v46 = vpop.permute.xlu1 %796  ;;  %v663_v36 = vpop.permute.xlu0 %662 }
 0x17f   :  { %v952_v24 = vsel %vm944_vm11, %v935_v26, %v3228_v46  ;;  %v903_v6 = vsel %vm893_vm8, %v886_v47, %v663_v36 }
 0x180   :  { %2283 = vmatmul.mubr.msk.f32.gmra.mxu0 %vm966_vm12, %v952_v24 }
 0x182   :  { %v522_v3 = vpop.permute.xlu1 %521  ;;  %v524_v44 = vpop.permute.xlu0 %523 }
 0x183   :  { %v853_v4 = vsel %vm843_vm5, %v837_v61, %v522_v3  ;;  %v854_v17 = vsel %vm843_vm5, %v838_v57, %v524_v44 }
 0x186   :  { %v709_v40 = vpop.permute.xlu1 %708  ;;  %v711_v62 = vpop.permute.xlu0 %710 }
 0x187   :  { %v919_v23 = vsel %vm910_vm9, %v902_v20, %v709_v40  ;;  %v920_v63 = vsel %vm910_vm9, %v903_v6, %v711_v62 }
 0x18a   :  { %v569_v55 = vpop.permute.xlu1 %568  ;;  %v571_v18 = vpop.permute.xlu0 %570 }
 0x18b   :  { %v870_v51 = vsel %vm859_vm6, %v853_v4, %v569_v55  ;;  %v871_v3 = vsel %vm859_vm6, %v854_v17, %v571_v18 }
 0x18e   :  { %v754_v53 = vpop.permute.xlu1 %753  ;;  %v756_v14 = vpop.permute.xlu0 %755 }
 0x18f   :  { %v936_v27 = vsel %vm927_vm10, %v919_v23, %v754_v53  ;;  %v937_v7 = vsel %vm927_vm10, %v920_v63, %v756_v14 }
 0x192   :  { %v617_v52 = vpop.permute.xlu1 %616  ;;  %v3236_v50 = vpop.permute.xlu0 %480 }
 0x193   :  { %v887_v8 = vsel %vm876_vm7, %v870_v51, %v617_v52 }
 0x196   :  { %v799_v43 = vpop.permute.xlu1 %798 }
 0x197   :  { %v953_v28 = vsel %vm944_vm11, %v936_v27, %v799_v43  ;;  %v665_v22 = vpop.permute.xlu0 %664 }
 0x198   :  { %2285 = vmatprep.mubr.msk.f32.mxu0 %vm966_vm12, %v953_v28  ;;  %v904_v42 = vsel %vm893_vm8, %v887_v8, %v665_v22  ;;  %v839_v28 = vsel %vm827_vm4, %v2956_v25, %v3236_v50 }
 0x19a   :  { %v619_v13 = vpop.permute.xlu1 %618 }
 0x19b   :  { %v483_v15 = vpop.permute.xlu0 %482  ;;  %v888_v62 = vsel %vm876_vm7, %v871_v3, %v619_v13 }
 0x19c   :  { %v840_v22 = vsel %vm827_vm4, %v2988_v0, %v483_v15 }
 0x19e   :  { %v801_v60 = vpop.permute.xlu1 %800 }
 0x19f   :  { %v954_v31 = vsel %vm944_vm11, %v937_v7, %v801_v60  ;;  %v667_v58 = vpop.permute.xlu0 %666 }
 0x1a0   :  { %2286 = vmatmul.mubr.msk.f32.gmra.mxu0 %vm966_vm12, %v954_v31  ;;  %v905_v53 = vsel %vm893_vm8, %v888_v62, %v667_v58 }
 0x1a2   :  { %v526_v34 = vpop.permute.xlu1 %525 }
 0x1a3   :  { %v528_v5 = vpop.permute.xlu0 %527  ;;  %v855_v12 = vsel %vm843_vm5, %v839_v28, %v526_v34 }
 0x1a4   :  { %v856_v59 = vsel %vm843_vm5, %v840_v22, %v528_v5 }
 0x1a6   :  { %v713_v37 = vpop.permute.xlu1 %712 }
 0x1a7   :  { %v715_v48 = vpop.permute.xlu0 %714  ;;  %v921_v39 = vsel %vm910_vm9, %v904_v42, %v713_v37 }
 0x1a8   :  { %v922_v14 = vsel %vm910_vm9, %v905_v53, %v715_v48 }
 0x1aa   :  { %v573_v45 = vpop.permute.xlu1 %572 }
 0x1ab   :  { %v575_v56 = vpop.permute.xlu0 %574  ;;  %v872_v13 = vsel %vm859_vm6, %v855_v12, %v573_v45 }
 0x1ac   :  { %v873_v6 = vsel %vm859_vm6, %v856_v59, %v575_v56 }
 0x1ae   :  { %v758_v2 = vpop.permute.xlu1 %757 }
 0x1af   :  { %v760_v9 = vpop.permute.xlu0 %759  ;;  %v938_v1 = vsel %vm927_vm10, %v921_v39, %v758_v2 }
 0x1b0   :  { %v939_v11 = vsel %vm927_vm10, %v922_v14, %v760_v9 }
 0x1b2   :  { %v621_v10 = vpop.permute.xlu1 %620 }
 0x1b3   :  { %v485_v35 = vpop.permute.xlu0 %484  ;;  %v889_v63 = vsel %vm876_vm7, %v872_v13, %v621_v10 }
 0x1b4   :  { %v841_v56 = vsel %vm827_vm4, %v3068_v30, %v485_v35 }
 0x1b6   :  { %v803_v26 = vpop.permute.xlu1 %802 }
 0x1b7   :  { %v955_v36 = vsel %vm944_vm11, %v938_v1, %v803_v26  ;;  %v669_v24 = vpop.permute.xlu0 %668 }
 0x1b8   :  { %2288 = vmatprep.mubr.msk.f32.mxu0 %vm966_vm12, %v955_v36  ;;  %v906_v60 = vsel %vm893_vm8, %v889_v63, %v669_v24 }
 0x1ba   :  { %v623_v40 = vpop.permute.xlu1 %622 }
 0x1bb   :  { %v487_v55 = vpop.permute.xlu0 %486  ;;  %v890_v31 = vsel %vm876_vm7, %v873_v6, %v623_v40 }
 0x1bc   :  { %v842_v2 = vsel %vm827_vm4, %v3098_v29, %v487_v55  ;;  %vm2034_vm4 = vcmask 588800  }
 0x1be   :  { %v805_v52 = vpop.permute.xlu1 %804 }
 0x1bf   :  { %v956_v19 = vsel %vm944_vm11, %v939_v11, %v805_v52  ;;  %v671_v33 = vpop.permute.xlu0 %670 }
 0x1c0   :  { %2289 = vmatmul.mubr.msk.f32.gmra.mxu0 %vm966_vm12, %v956_v19  ;;  %v907_v25 = vsel %vm893_vm8, %v890_v31, %v671_v33 }
 0x1c2   :  { %v530_v49 = vpop.permute.xlu1 %529 }
 0x1c3   :  { %v532_v44 = vpop.permute.xlu0 %531  ;;  %v857_v9 = vsel %vm843_vm5, %v841_v56, %v530_v49 }
 0x1c4   :  { %v858_v61 = vsel %vm843_vm5, %v842_v2, %v532_v44 }
 0x1c6   :  { %v717_v20 = vpop.permute.xlu1 %716 }
 0x1c7   :  { %v719_v18 = vpop.permute.xlu0 %718  ;;  %v923_v0 = vsel %vm910_vm9, %v906_v60, %v717_v20 }
 0x1c8   :  { %v924_v50 = vsel %vm910_vm9, %v907_v25, %v719_v18 }
 0x1ca   :  { %v577_v23 = vpop.permute.xlu1 %576 }
 0x1cb   :  { %v579_v16 = vpop.permute.xlu0 %578  ;;  %v874_v4 = vsel %vm859_vm6, %v857_v9, %v577_v23 }
 0x1cc   :  { %v875_v51 = vsel %vm859_vm6, %v858_v61, %v579_v16 }
 0x1ce   :  { %v762_v27 = vpop.permute.xlu1 %761 }
 0x1cf   :  { %v764_v43 = vpop.permute.xlu0 %763  ;;  %v940_v15 = vsel %vm927_vm10, %v923_v0, %v762_v27 }
 0x1d0   :  { %v941_v34 = vsel %vm927_vm10, %v924_v50, %v764_v43 }
 0x1d2   :  { %v625_v47 = vpop.permute.xlu1 %624 }
 0x1d3   :  { %v627_v7 = vpop.permute.xlu0 %626  ;;  %v891_v8 = vsel %vm876_vm7, %v874_v4, %v625_v47 }
 0x1d4   :  { %v892_v42 = vsel %vm876_vm7, %v875_v51, %v627_v7 }
 0x1d6   :  { %v807_v58 = vpop.permute.xlu1 %806 }
 0x1d7   :  { %v957_v5 = vsel %vm944_vm11, %v940_v15, %v807_v58  ;;  %v809_v37 = vpop.permute.xlu0 %808 }
 0x1d8   :  { %v958_v48 = vsel %vm944_vm11, %v941_v34, %v809_v37  ;;  %2291 = vmatprep.mubr.msk.f32.mxu0 %vm966_vm12, %v957_v5 }
 0x1d9   :  { %2292 = vmatmul.mubr.msk.f32.gmra.mxu0 %vm966_vm12, %v958_v48 }
 0x1da   :  { %v673_v45 = vpop.permute.xlu1 %672 }
 0x1db   :  { %v721_v10 = vpop.permute.xlu0 %720  ;;  %v908_v1 = vsel %vm893_vm8, %v891_v8, %v673_v45 }
 0x1dc   :  { %v925_v35 = vsel %vm910_vm9, %v908_v1, %v721_v10 }
 0x1de   :  { %v675_v39 = vpop.permute.xlu1 %674 }
 0x1df   :  { %v909_v30 = vsel %vm893_vm8, %v892_v42, %v675_v39  ;;  %v811_v24 = vpop.permute.xlu0 %810 }
 0x1e0   :  { %v926_v29 = vsel %vm910_vm9, %v909_v30, %v3185_v54 }
 0x1e1   :  { %v943_v36 = vsel %vm927_vm10, %v926_v29, %v3192_v21 }
 0x1e2   :  { %v766_v26 = vpop.permute.xlu1 %765  ;;  %v960_v3 = vsel %vm944_vm11, %v943_v36, %v3228_v46 }
 0x1e3   :  { %v942_v57 = vsel %vm927_vm10, %v925_v35, %v766_v26 }
 0x1e4   :  { %v959_v17 = vsel %vm944_vm11, %v942_v57, %v811_v24 }
 0x1e5   :  { %2294 = vmatprep.mubr.msk.f32.mxu0 %vm966_vm12, %v959_v17 }
 0x1e6   :  { %2295 = vmatmul.mubr.msk.f32.gmra.mxu0 %vm966_vm12, %v960_v3 }
 0x1ec   :  { %v3325_v54 = vpop.f32.mrf.mxu0 }
 0x1ed   :  { %v1202_v38 = vmul.f32 %v3325_v54, %v3325_v54  ;;  %v1165_v14 = vsel %vm843_vm5, %v3325_v54, 0.0 }
 0x1ee   :  { %v3327_v21 = vpop.f32.mrf.mxu0 }
 0x1ef   :  { %v1201_v62 = vmul.f32 %v3327_v21, %v3327_v21  ;;  %v1164_v53 = vsel %vm843_vm5, %v3327_v21, 0.0  ;;  %v1218_v49 = vsel %vm843_vm5, %v1202_v38, 0.0 }
 0x1f0   :  { %v1166_v19 = vadd.f32 %v1165_v14, %v1164_v53 }
 0x1f1   :  { %v1217_v11 = vsel %vm843_vm5, %v1201_v62, 0.0 }
 0x1f2   :  { %v1219_v20 = vadd.f32 %v1218_v49, %v1217_v11 }
 0x204   :  { %v3329_v40 = vpop.f32.mrf.mxu0 }
 0x205   :  { %v1204_v16 = vmul.f32 %v3329_v40, %v3329_v40  ;;  %v1169_v28 = vsel %vm843_vm5, %v3329_v40, 0.0 }
 0x206   :  { %v3331_v46 = vpop.f32.mrf.mxu0 }
 0x207   :  { %v1203_v41 = vmul.f32 %v3331_v46, %v3331_v46  ;;  %v1167_v52 = vsel %vm843_vm5, %v3331_v46, 0.0  ;;  %v1222_v13 = vsel %vm843_vm5, %v1204_v16, 0.0 }
 0x208   :  { %v1168_v18 = vadd.f32 %v1167_v52, %v1166_v19 }
 0x209   :  { %v1220_v44 = vsel %vm843_vm5, %v1203_v41, 0.0 }
 0x20a   :  { %v1221_v43 = vadd.f32 %v1220_v44, %v1219_v20  ;;  %v1170_v12 = vadd.f32 %v1169_v28, %v1168_v18 }
 0x20c   :  { %v1223_v63 = vadd.f32 %v1222_v13, %v1221_v43 }
 0x21d   :  { %v3335_v55 = vpop.f32.mrf.mxu0 }
 0x21e   :  { %v1206_v60 = vmul.f32 %v3335_v55, %v3335_v55  ;;  %v1173_v0 = vsel %vm843_vm5, %v3335_v55, 0.0 }
 0x21f   :  { %v3348_v33 = vpop.f32.mrf.mxu0 }
 0x220   :  { %v1205_v27 = vmul.f32 %v3348_v33, %v3348_v33  ;;  %v1171_v22 = vsel %vm843_vm5, %v3348_v33, 0.0  ;;  %v1226_v34 = vsel %vm843_vm5, %v1206_v60, 0.0 }
 0x221   :  { %v1172_v6 = vadd.f32 %v1171_v22, %v1170_v12 }
 0x222   :  { %v1224_v47 = vsel %vm843_vm5, %v1205_v27, 0.0 }
 0x223   :  { %v1225_v25 = vadd.f32 %v1224_v47, %v1223_v63  ;;  %v1174_v15 = vadd.f32 %v1173_v0, %v1172_v6 }
 0x225   :  { %v1227_v48 = vadd.f32 %v1226_v34, %v1225_v25 }
 0x240   :  { %v3352_v23 = vpop.f32.mrf.mxu0 }
 0x241   :  { %v1208_v56 = vmul.f32 %v3352_v23, %v3352_v23  ;;  %v1177_v61 = vsel %vm843_vm5, %v3352_v23, 0.0 }
 0x242   :  { %v3362_v59 = vpop.f32.mrf.mxu0 }
 0x243   :  { %v1207_v31 = vmul.f32 %v3362_v59, %v3362_v59  ;;  %v1175_v50 = vsel %vm843_vm5, %v3362_v59, 0.0  ;;  %v1230_v8 = vsel %vm843_vm5, %v1208_v56, 0.0 }
 0x244   :  { %v1176_v37 = vadd.f32 %v1175_v50, %v1174_v15 }
 0x245   :  { %v1228_v5 = vsel %vm843_vm5, %v1207_v31, 0.0 }
 0x246   :  { %v1229_v9 = vadd.f32 %v1228_v5, %v1227_v48  ;;  %v1178_v51 = vadd.f32 %v1177_v61, %v1176_v37 }
 0x248   :  { %v1231_v1 = vadd.f32 %v1230_v8, %v1229_v9 }
 0x260   :  { %v3366_v7 = vpop.f32.mrf.mxu0 }
 0x261   :  { %v1210_v30 = vmul.f32 %v3366_v7, %v3366_v7  ;;  %v1181_v36 = vsel %vm843_vm5, %v3366_v7, 0.0 }
 0x262   :  { %v3376_v58 = vpop.f32.mrf.mxu0 }
 0x263   :  { %v1209_v2 = vmul.f32 %v3376_v58, %v3376_v58  ;;  %v1179_v4 = vsel %vm843_vm5, %v3376_v58, 0.0  ;;  %v1234_v3 = vsel %vm843_vm5, %v1210_v30, 0.0 }
 0x264   :  { %v1180_v39 = vadd.f32 %v1179_v4, %v1178_v51 }
 0x265   :  { %v1232_v42 = vsel %vm843_vm5, %v1209_v2, 0.0 }
 0x266   :  { %v1233_v26 = vadd.f32 %v1232_v42, %v1231_v1  ;;  %v1182_v57 = vadd.f32 %v1181_v36, %v1180_v39 }
 0x268   :  { %v1235_v53 = vadd.f32 %v1234_v3, %v1233_v26 }
 0x280   :  { %v3380_v45 = vpop.f32.mrf.mxu0 }
 0x281   :  { %v1212_v41 = vmul.f32 %v3380_v45, %v3380_v45  ;;  %v1185_v52 = vsel %vm843_vm5, %v3380_v45, 0.0 }
 0x282   :  { %v3390_v10 = vpop.f32.mrf.mxu0 }
 0x283   :  { %v1211_v29 = vmul.f32 %v3390_v10, %v3390_v10  ;;  %v1183_v24 = vsel %vm843_vm5, %v3390_v10, 0.0  ;;  %v1238_v44 = vsel %vm843_vm5, %v1212_v41, 0.0 }
 0x284   :  { %v1184_v38 = vadd.f32 %v1183_v24, %v1182_v57 }
 0x285   :  { %v1236_v62 = vsel %vm843_vm5, %v1211_v29, 0.0 }
 0x286   :  { %v1237_v11 = vadd.f32 %v1236_v62, %v1235_v53  ;;  %v1186_v49 = vadd.f32 %v1185_v52, %v1184_v38  ;;  %v1267_v62 = vlaneseq  ;;  %v1259_v53 = vld [vmem:[%s4171_s2] sm:$0x1]  ;;  %s2367_s2 = smov 40  }
 0x287   :  { %v1263_v52 = vld [vmem:[%s4172_s3] sm:$0x1] }
 0x288   :  { %v1239_v16 = vadd.f32 %v1238_v44, %v1237_v11  ;;  %v1268_v38 = vshrl.u32 %v1267_v62, 7 }
 0x28a   :  { %v1269_v41 = vsub.s32 0, %v1268_v38 }
 0x299   :  { %v3398_v35 = vpop.f32.mrf.mxu0 }
 0x29a   :  { %v1214_v27 = vmul.f32 %v3398_v35, %v3398_v35  ;;  %v1189_v22 = vsel %vm843_vm5, %v3398_v35, 0.0 }
 0x29b   :  { %v3404_v17 = vpop.f32.mrf.mxu0 }
 0x29c   :  { %v1213_v14 = vmul.f32 %v3404_v17, %v3404_v17  ;;  %v1187_v19 = vsel %vm843_vm5, %v3404_v17, 0.0  ;;  %v1242_v47 = vsel %vm843_vm5, %v1214_v27, 0.0 }
 0x29d   :  { %v1188_v18 = vadd.f32 %v1187_v19, %v1186_v49 }
 0x29e   :  { %v1240_v20 = vsel %vm843_vm5, %v1213_v14, 0.0 }
 0x29f   :  { %v1241_v43 = vadd.f32 %v1240_v20, %v1239_v16  ;;  %v1190_v13 = vadd.f32 %v1189_v22, %v1188_v18 }
 0x2a1   :  { %v1243_v25 = vadd.f32 %v1242_v47, %v1241_v43 }
 0x2a6   :  { %v2296_v28 = vpop.f32.mrf.mxu0 }
 0x2a7   :  { %v1216_v6 = vmul.f32 %v2296_v28, %v2296_v28  ;;  %v1193_v0 = vsel %vm843_vm5, %v2296_v28, 0.0 }
 0x2a8   :  { %v1155_v12 = vpop.f32.mrf.mxu0 }
 0x2a9   :  { %v1191_v63 = vsel %vm843_vm5, %v1155_v12, 0.0  ;;  %v1215_v60 = vmul.f32 %v1155_v12, %v1155_v12  ;;  %v1246_v5 = vsel %vm843_vm5, %v1216_v6, 0.0 }
 0x2aa   :  { %v1192_v31 = vadd.f32 %v1191_v63, %v1190_v13 }
 0x2ab   :  { %v1244_v50 = vsel %vm843_vm5, %v1215_v60, 0.0 }
 0x2ac   :  { %v1194_v15 = vadd.f32 %v1193_v0, %v1192_v31  ;;  %v1245_v34 = vadd.f32 %v1244_v50, %v1243_v25 }
 0x2ae   :  { %v1195_v37 = vrot.slane %v1194_v15, 4  ;;  %v1247_v48 = vadd.f32 %v1246_v5, %v1245_v34 }
 0x2b0   :  { %v1196_v56 = vadd.f32 %v1195_v37, %v1194_v15  ;;  %v1248_v2 = vrot.slane %v1247_v48, 4 }
 0x2b2   :  { %v1197_v9 = vrot.slane %v1196_v56, 2  ;;  %v1249_v61 = vadd.f32 %v1248_v2, %v1247_v48 }
 0x2b4   :  { %v1198_v4 = vadd.f32 %v1197_v9, %v1196_v56  ;;  %v1250_v51 = vrot.slane %v1249_v61, 2 }
 0x2b6   :  { %v1199_v8 = vrot.slane %v1198_v4, 1  ;;  %v1251_v42 = vadd.f32 %v1250_v51, %v1249_v61 }
 0x2b8   :  { %v1200_v39 = vadd.f32 %v1199_v8, %v1198_v4  ;;  %v1252_v1 = vrot.slane %v1251_v42, 1 }
 0x2ba   :  { %v1253_v30 = vadd.f32 %v1252_v1, %v1251_v42  ;;  %v1254_v29 = vmul.f32 0.0078125, %v1200_v39 }
 0x2bc   :  { %v1255_v26 = vmul.f32 0.0078125, %v1253_v30  ;;  %v1256_v36 = vmul.f32 %v1254_v29, %v1254_v29 }
 0x2be   :  { %v1257_v24 = vsub.f32 %v1255_v26, %v1256_v36 }
 0x2c0   :  { %v1258_v57 = vmax.f32 %v1257_v24, 0.0 }
 0x2c2   :  { %v1260_v3 = vadd.f32 1e-05, %v1258_v57 }
 0x2c4   :  { %2350 = vrsqrt.f32 %v1260_v3 }
 0x2d1   :  { %v2351_v14 = vpop.eup %2350 }
 0x2d2   :  { %v1262_v11 = vmul.f32 %v2351_v14, %v1259_v53 }
 0x2d4   :  { %v1264_v19 = vmul.f32 %v1262_v11, %v1254_v29  ;;  %v3433_v49 = vrot.slane %v1262_v11, %v1269_v41 }
 0x2d6   :  { %v1265_v44 = vsub.f32 %v1263_v52, %v1264_v19  ;;  %v1286_v20 = vmul.f32 %v3433_v49, %v1155_v12  ;;  %v1287_v16 = vmul.f32 %v2296_v28, %v3433_v49  ;;  %v1285_v22 = vmul.f32 %v3398_v35, %v3433_v49 }
 0x2d7   :  { %v1284_v12 = vmul.f32 %v3433_v49, %v3404_v17  ;;  %v1283_v35 = vmul.f32 %v3380_v45, %v3433_v49  ;;  %v1282_v34 = vmul.f32 %v3433_v49, %v3390_v10  ;;  %v1279_v45 = vmul.f32 %v3352_v23, %v3433_v49 }
 0x2d8   :  { %v3436_v18 = vrot.slane %v1265_v44, %v1269_v41  ;;  %v1281_v23 = vmul.f32 %v3366_v7, %v3433_v49  ;;  %v1280_v8 = vmul.f32 %v3433_v49, %v3376_v58  ;;  %v1278_v7 = vmul.f32 %v3433_v49, %v3362_v59 }
 0x2d9   :  { %v1277_v59 = vmul.f32 %v3335_v55, %v3433_v49  ;;  %v1276_v38 = vmul.f32 %v3433_v49, %v3348_v33  ;;  %v1275_v33 = vmul.f32 %v3329_v40, %v3433_v49 }
 0x2da   :  { %v1308_v27 = vadd.f32 %v3436_v18, %v1286_v20  ;;  %v1309_v43 = vadd.f32 %v3436_v18, %v1287_v16  ;;  %v1307_v6 = vadd.f32 %v3436_v18, %v1285_v22  ;;  %v1306_v25 = vadd.f32 %v3436_v18, %v1284_v12 }
 0x2db   :  { %v1305_v15 = vadd.f32 %v3436_v18, %v1283_v35  ;;  %v1304_v5 = vadd.f32 %v3436_v18, %v1282_v34  ;;  %v1301_v2 = vadd.f32 %v3436_v18, %v1279_v45  ;;  %v1303_v10 = vadd.f32 %v3436_v18, %v1281_v23 }
 0x2dc   :  { %v1324_v13 = vmax.f32 %v1308_v27, 0.0  ;;  %v1325_v47 = vmax.f32 %v1309_v43, 0.0  ;;  %v1323_v31 = vmax.f32 %v1307_v6, 0.0  ;;  %v1322_v50 = vmax.f32 %v1306_v25, 0.0 }
 0x2dd   :  { %v1321_v56 = vmax.f32 %v1305_v15, 0.0  ;;  %v1320_v4 = vmax.f32 %v1304_v5, 0.0  ;;  %v1317_v51 = vmax.f32 %v1301_v2, 0.0  ;;  %v1319_v42 = vmax.f32 %v1303_v10, 0.0 }
 0x2de   :  { %v3444_v63 = vrot.slane %v1325_v47, 7  ;;  %v3448_v60 = vrot.slane %v1324_v13, 7  ;;  %v3465_v0 = vrot.slane %v1323_v31, 7  ;;  %v3481_v48 = vrot.slane %v1322_v50, 7 }
 0x2df   :  { %v3495_v61 = vrot.slane %v1321_v56, 7  ;;  %v1302_v39 = vadd.f32 %v3436_v18, %v1280_v8  ;;  %v3510_v30 = vrot.slane %v1320_v4, 7  ;;  %v1300_v29 = vadd.f32 %v3436_v18, %v1278_v7 }
 0x2e0   :  { %v3452_v28 = vsel %vm285_vm0, 0.0, %v3444_v63  ;;  %v3463_v17 = vsel %vm285_vm0, 0.0, %v3448_v60  ;;  %v3479_v37 = vsel %vm285_vm0, 0.0, %v3465_v0  ;;  %v3493_v9 = vsel %vm285_vm0, 0.0, %v3481_v48 }
 0x2e1   :  { %1796 = vrot.lane.b32.xlu0 %v3452_v28, %s2364_s1  ;;  %1654 = vrot.lane.b32.xlu1 %v3452_v28, %s2359_s23  ;;  %v3508_v1 = vsel %vm285_vm0, 0.0, %v3495_v61  ;;  %v1349_v26 = vrot.slane %v1317_v51, 7  ;;  %v3519_v58 = vrot.slane %v1319_v42, 7  ;;  %v1318_v36 = vmax.f32 %v1302_v39, 0.0 }
 0x2e2   :  { %v3523_v24 = vsel %vm285_vm0, 0.0, %v3510_v30  ;;  %v1316_v57 = vmax.f32 %v1300_v29, 0.0  ;;  %v1299_v62 = vadd.f32 %v3436_v18, %v1277_v59  ;;  %v1298_v44 = vadd.f32 %v3436_v18, %v1276_v38 }
 0x2e3   :  { %v1381_v3 = vsel %vm285_vm0, 0.0, %v1349_v26  ;;  %v1397_v55 = vsel %vm285_vm0, %v1349_v26, 0.0  ;;  %v3536_v53 = vsel %vm285_vm0, 0.0, %v3519_v58  ;;  %v3538_v41 = vrot.slane %v1318_v36, 7 }
 0x2e4   :  { %v1522_v14 = vrot.slane %v1381_v3, 1  ;;  %v3540_v11 = vrot.slane %v1316_v57, 7  ;;  %v1528_v52 = vrot.slane %v1381_v3, 2  ;;  %v1315_v19 = vmax.f32 %v1299_v62, 0.0 }
 0x2e5   :  { %1794 = vrot.lane.b32.xlu0 %v3463_v17, %s2364_s1  ;;  %1652 = vrot.lane.b32.xlu1 %v3463_v17, %s2359_s23  ;;  %v1523_v20 = vrot.slane %v1397_v55, 1  ;;  %v1529_v16 = vrot.slane %v1397_v55, 2  ;;  %v3551_v27 = vsel %vm285_vm0, 0.0, %v3538_v41  ;;  %v1297_v43 = vadd.f32 %v3436_v18, %v1275_v33 }
 0x2e6   :  { %v3559_v13 = vsel %vm285_vm0, 0.0, %v3540_v11  ;;  %v3561_v47 = vrot.slane %v1315_v19, 7  ;;  %v1314_v6 = vmax.f32 %v1298_v44, 0.0  ;;  %v1274_v12 = vmul.f32 %v3433_v49, %v3331_v46 }
 0x2e7   :  { %v3555_v22 = vsel %vm350_vm1, %v1522_v14, %v1523_v20  ;;  %v3564_v40 = vsel %vm396_vm2, %v1528_v52, %v1529_v16  ;;  %v1313_v35 = vmax.f32 %v1297_v43, 0.0  ;;  %v1273_v15 = vmul.f32 %v3325_v54, %v3433_v49 }
 0x2e8   :  { %v3574_v31 = vsel %vm285_vm0, 0.0, %v3561_v47  ;;  %v3576_v25 = vrot.slane %v1314_v6, 7  ;;  %v1296_v50 = vadd.f32 %v3436_v18, %v1274_v12  ;;  %v1272_v46 = vmul.f32 %v3433_v49, %v3327_v21 }
 0x2e9   :  { %1792 = vrot.lane.b32.xlu0 %v3479_v37, %s2364_s1  ;;  %1650 = vrot.lane.b32.xlu1 %v3479_v37, %s2359_s23  ;;  %v3590_v45 = vrot.slane %v1313_v35, 7  ;;  %v1295_v56 = vadd.f32 %v3436_v18, %v1273_v15  ;;  %v1515_v8 = vrot.slane %v3463_v17, 2  ;;  %v1405_v7 = vsel %vm285_vm0, %v3444_v63, 0.0 }
 0x2ea   :  { %v3588_v34 = vsel %vm285_vm0, 0.0, %v3576_v25  ;;  %v1312_v5 = vmax.f32 %v1296_v50, 0.0  ;;  %v3597_v2 = vadd.f32 %v3436_v18, %v1272_v46  ;;  %v1404_v18 = vsel %vm285_vm0, %v3448_v60, 0.0 }
 0x2eb   :  { %v3601_v54 = vsel %vm285_vm0, 0.0, %v3590_v45  ;;  %v1311_v49 = vmax.f32 %v1295_v56, 0.0  ;;  %v1516_v4 = vrot.slane %v1404_v18, 2  ;;  %v1474_v60 = vrot.slane %v1404_v18, 1 }
 0x2ec   :  { %v3603_v21 = vrot.slane %v1312_v5, 7  ;;  %v1525_v42 = vrot.slane %v3452_v28, 1  ;;  %v1473_v29 = vrot.slane %v3463_v17, 1  ;;  %v1526_v26 = vrot.slane %v1405_v7, 1 }
 0x2ed   :  { %1790 = vrot.lane.b32.xlu0 %v3493_v9, %s2364_s1  ;;  %1648 = vrot.lane.b32.xlu1 %v3493_v9, %s2359_s23  ;;  %v3613_v10 = vrot.slane %v1311_v49, 7  ;;  %v1517_v39 = vsel %vm396_vm2, %v1515_v8, %v1516_v4  ;;  %v1403_v63 = vsel %vm285_vm0, %v3465_v0, 0.0  ;;  %v1531_v59 = vrot.slane %v3452_v28, 2 }
 0x2ee   :  { %v3611_v23 = vsel %vm285_vm0, 0.0, %v3603_v21  ;;  %v1470_v36 = vrot.slane %v3479_v37, 1  ;;  %v1475_v57 = vsel %vm350_vm1, %v1473_v29, %v1474_v60  ;;  %v1471_v62 = vrot.slane %v1403_v63, 1 }
 0x2ef   :  { %v3623_v51 = vsel %vm285_vm0, 0.0, %v3613_v10  ;;  %v1532_v55 = vrot.slane %v1405_v7, 2  ;;  %v1512_v0 = vrot.slane %v3479_v37, 2  ;;  %v1513_v52 = vrot.slane %v1403_v63, 2  ;;  %v3687_v7 = vpop.permute.xlu0 %1782 }
 0x2f0   :  { %v1472_v38 = vsel %vm350_vm1, %v1470_v36, %v1471_v62  ;;  %v1402_v19 = vsel %vm285_vm0, %v3481_v48, 0.0  ;;  %v1467_v44 = vrot.slane %v3493_v9, 1  ;;  %v1509_v16 = vrot.slane %v3493_v9, 2 }
 0x2f1   :  { %1788 = vrot.lane.b32.xlu0 %v3508_v1, %s2364_s1  ;;  %1646 = vrot.lane.b32.xlu1 %v3508_v1, %s2359_s23  ;;  %v1533_v14 = vsel %vm396_vm2, %v1531_v59, %v1532_v55  ;;  %v1514_v28 = vsel %vm396_vm2, %v1512_v0, %v1513_v52  ;;  %v1468_v33 = vrot.slane %v1402_v19, 1  ;;  %v1510_v43 = vrot.slane %v1402_v19, 2 }
 0x2f2   :  { %v1401_v48 = vsel %vm285_vm0, %v3495_v61, 0.0  ;;  %v1464_v12 = vrot.slane %v3508_v1, 1  ;;  %v1506_v15 = vrot.slane %v3508_v1, 2  ;;  %v1400_v61 = vsel %vm285_vm0, %v3510_v30, 0.0 }
 0x2f3   :  { %v1469_v20 = vsel %vm350_vm1, %v1467_v44, %v1468_v33  ;;  %v1511_v6 = vsel %vm396_vm2, %v1509_v16, %v1510_v43  ;;  %v1465_v35 = vrot.slane %v1401_v48, 1  ;;  %v1507_v46 = vrot.slane %v1401_v48, 2 }
 0x2f4   :  { %v1461_v56 = vrot.slane %v3523_v24, 1  ;;  %v1462_v49 = vrot.slane %v1400_v61, 1  ;;  %v1503_v4 = vrot.slane %v3523_v24, 2  ;;  %v1504_v8 = vrot.slane %v1400_v61, 2 }
 0x2f5   :  { %1786 = vrot.lane.b32.xlu0 %v3523_v24, %s2364_s1  ;;  %1644 = vrot.lane.b32.xlu1 %v3523_v24, %s2359_s23  ;;  %v1466_v50 = vsel %vm350_vm1, %v1464_v12, %v1465_v35  ;;  %v1508_v5 = vsel %vm396_vm2, %v1506_v15, %v1507_v46  ;;  %v1399_v60 = vsel %vm285_vm0, %v3519_v58, 0.0  ;;  %v1500_v59 = vrot.slane %v3536_v53, 2 }
 0x2f6   :  { %v1463_v18 = vsel %vm350_vm1, %v1461_v56, %v1462_v49  ;;  %v1505_v30 = vsel %vm396_vm2, %v1503_v4, %v1504_v8  ;;  %v1459_v29 = vrot.slane %v1399_v60, 1  ;;  %v1501_v36 = vrot.slane %v1399_v60, 2 }
 0x2f7   :  { %v1398_v62 = vsel %vm285_vm0, %v3538_v41, 0.0  ;;  %v1497_v41 = vrot.slane %v3551_v27, 2  ;;  %v1396_v48 = vsel %vm285_vm0, %v3540_v11, 0.0  ;;  %v1494_v11 = vrot.slane %v3559_v13, 2 }
 0x2f8   :  { %v1456_v0 = vrot.slane %v1398_v62, 1  ;;  %v1498_v44 = vrot.slane %v1398_v62, 2  ;;  %v1453_v15 = vrot.slane %v1396_v48, 1  ;;  %v1495_v56 = vrot.slane %v1396_v48, 2 }
 0x2f9   :  { %1784 = vrot.lane.b32.xlu0 %v3536_v53, %s2364_s1  ;;  %1642 = vrot.lane.b32.xlu1 %v3536_v53, %s2359_s23  ;;  %v1395_v8 = vsel %vm285_vm0, %v3561_v47, 0.0  ;;  %v1491_v47 = vrot.slane %v3574_v31, 2 }
 0x2fa   :  { %v1499_v16 = vsel %vm396_vm2, %v1497_v41, %v1498_v44  ;;  %v3767_v4 = vsel %vm396_vm2, %v1494_v11, %v1495_v56  ;;  %v1393_v56 = vsel %vm285_vm0, %v3590_v45, 0.0  ;;  %v1485_v45 = vrot.slane %v3601_v54, 2 }
 0x2fd   :  { %1640 = vrot.lane.b32.xlu1 %v3551_v27, %s2359_s23  ;;  %1636 = vrot.lane.b32.xlu0 %v3559_v13, %s2359_s23 }
 0x301   :  { %1638 = vrot.lane.b32.xlu1 %v1381_v3, %s2359_s23  ;;  %1634 = vrot.lane.b32.xlu0 %v3574_v31, %s2359_s23 }
 0x305   :  { %1780 = vrot.lane.b32.xlu1 %v1381_v3, %s2364_s1  ;;  %1632 = vrot.lane.b32.xlu0 %v3588_v34, %s2359_s23  ;;  %v1527_v3 = vsel %vm350_vm1, %v1525_v42, %v1526_v26  ;;  %v3694_v42 = vpop.permute.xlu0 %1827  ;;  %v3697_v26 = vpop.permute.xlu1 %1534 }
 0x309   :  { %1778 = vrot.lane.b32.xlu1 %v3559_v13, %s2364_s1  ;;  %1630 = vrot.lane.b32.xlu0 %v3601_v54, %s2359_s23  ;;  %v3705_v58 = vpop.permute.xlu0 %1872 }
 0x30d   :  { %1776 = vrot.lane.b32.xlu1 %v3574_v31, %s2364_s1  ;;  %1628 = vrot.lane.b32.xlu0 %v3611_v23, %s2359_s23 }
 0x311   :  { %1774 = vrot.lane.b32.xlu1 %v3588_v34, %s2364_s1  ;;  %1626 = vrot.lane.b32.xlu0 %v3623_v51, %s2359_s23 }
 0x315   :  { %1772 = vrot.lane.b32.xlu1 %v3601_v54, %s2364_s1  ;;  %1607 = vrot.lane.b32.xlu0 %v1517_v39, %s2360_s24 }
 0x319   :  { %1562 = vrot.lane.b32.xlu1 %v1475_v57, %s2357_s0  ;;  %1702 = vrot.lane.b32.xlu0 %v1527_v3, %s2363_s15 }
 0x31d   :  { %1560 = vrot.lane.b32.xlu1 %v1472_v38, %s2357_s0  ;;  %1750 = vrot.lane.b32.xlu0 %v1533_v14, %s2367_s2 }
 0x321   :  { %1605 = vrot.lane.b32.xlu1 %v1514_v28, %s2360_s24  ;;  %1748 = vrot.lane.b32.xlu0 %v1517_v39, %s2367_s2 }
 0x325   :  { %1700 = vrot.lane.b32.xlu1 %v1475_v57, %s2363_s15  ;;  %1841 = vrot.lane.b32.xlu0 %v1527_v3, %s2365_s16  ;;  %v1502_v3 = vsel %vm396_vm2, %v1500_v59, %v1501_v36  ;;  %v1394_v59 = vsel %vm285_vm0, %v3576_v25, 0.0 }
 0x326   :  { %v1447_v41 = vrot.slane %v1394_v59, 1  ;;  %v1489_v48 = vrot.slane %v1394_v59, 2  ;;  %v1444_v59 = vrot.slane %v1393_v56, 1 }
 0x329   :  { %1558 = vrot.lane.b32.xlu1 %v1469_v20, %s2357_s0  ;;  %1886 = vrot.lane.b32.xlu0 %v1533_v14, %s2366_s17  ;;  %v1455_v14 = vrot.slane %v3551_v27, 1 }
 0x32b   :  { %v1457_v19 = vsel %vm350_vm1, %v1455_v14, %v1456_v0  ;;  %v1492_v14 = vrot.slane %v1395_v8, 2  ;;  %v1446_v0 = vrot.slane %v3588_v34, 1 }
 0x32d   :  { %1603 = vrot.lane.b32.xlu1 %v1511_v6, %s2360_s24  ;;  %1746 = vrot.lane.b32.xlu0 %v1514_v28, %s2367_s2  ;;  %v3805_v44 = vsel %vm350_vm1, %v1446_v0, %v1447_v41  ;;  %v1486_v41 = vrot.slane %v1393_v56, 2  ;;  %v1392_v56 = vsel %vm285_vm0, %v3603_v21, 0.0 }
 0x331   :  { %1698 = vrot.lane.b32.xlu1 %v1472_v38, %s2363_s15  ;;  %1839 = vrot.lane.b32.xlu0 %v1475_v57, %s2365_s16  ;;  %v3707_v57 = vpop.permute.xlu1 %1579 }
 0x335   :  { %1556 = vrot.lane.b32.xlu1 %v1466_v50, %s2357_s0  ;;  %1884 = vrot.lane.b32.xlu0 %v1517_v39, %s2366_s17  ;;  %v1458_v39 = vrot.slane %v3536_v53, 1 }
 0x337   :  { %v1460_v63 = vsel %vm350_vm1, %v1458_v39, %v1459_v29  ;;  %v1449_v39 = vrot.slane %v3574_v31, 1  ;;  %v1450_v29 = vrot.slane %v1395_v8, 1 }
 0x339   :  { %1601 = vrot.lane.b32.xlu1 %v1508_v5, %s2360_s24  ;;  %1744 = vrot.lane.b32.xlu0 %v1511_v6, %s2367_s2  ;;  %v3790_v62 = vsel %vm350_vm1, %v1449_v39, %v1450_v29  ;;  %v1443_v29 = vrot.slane %v3601_v54, 1 }
 0x33b   :  { %v3839_v0 = vsel %vm350_vm1, %v1443_v29, %v1444_v59 }
 0x33d   :  { %1696 = vrot.lane.b32.xlu1 %v1469_v20, %s2363_s15  ;;  %1837 = vrot.lane.b32.xlu0 %v1472_v38, %s2365_s16 }
 0x341   :  { %1554 = vrot.lane.b32.xlu1 %v1463_v18, %s2357_s0  ;;  %1882 = vrot.lane.b32.xlu0 %v1514_v28, %s2366_s17 }
 0x345   :  { %1599 = vrot.lane.b32.xlu1 %v1505_v30, %s2360_s24  ;;  %1742 = vrot.lane.b32.xlu0 %v1508_v5, %s2367_s2 }
 0x349   :  { %1694 = vrot.lane.b32.xlu1 %v1466_v50, %s2363_s15  ;;  %1835 = vrot.lane.b32.xlu0 %v1469_v20, %s2365_s16 }
 0x34d   :  { %1552 = vrot.lane.b32.xlu1 %v1460_v63, %s2357_s0  ;;  %1880 = vrot.lane.b32.xlu0 %v1511_v6, %s2366_s17 }
 0x351   :  { %1597 = vrot.lane.b32.xlu1 %v1502_v3, %s2360_s24  ;;  %1740 = vrot.lane.b32.xlu0 %v1505_v30, %s2367_s2 }
 0x353   :  { %v3714_v55 = vpop.permute.xlu1 %1654  ;;  %v3716_v38 = vpop.permute.xlu0 %1796 }
 0x355   :  { %1692 = vrot.lane.b32.xlu1 %v1463_v18, %s2363_s15  ;;  %1833 = vrot.lane.b32.xlu0 %v1466_v50, %s2365_s16  ;;  %v1452_v50 = vrot.slane %v3559_v13, 1 }
 0x357   :  { %v3721_v52 = vpop.permute.xlu1 %1652  ;;  %v3723_v28 = vpop.permute.xlu0 %1794  ;;  %v3756_v61 = vsel %vm350_vm1, %v1452_v50, %v1453_v15 }
 0x359   :  { %1550 = vrot.lane.b32.xlu1 %v1457_v19, %s2357_s0  ;;  %1878 = vrot.lane.b32.xlu0 %v1508_v5, %s2366_s17 }
 0x35b   :  { %v3729_v33 = vpop.permute.xlu1 %1650  ;;  %v3731_v20 = vpop.permute.xlu0 %1792 }
 0x35d   :  { %1595 = vrot.lane.b32.xlu1 %v1499_v16, %s2360_s24  ;;  %1738 = vrot.lane.b32.xlu0 %v1502_v3, %s2367_s2 }
 0x35f   :  { %v3736_v43 = vpop.permute.xlu1 %1648  ;;  %v3738_v6 = vpop.permute.xlu0 %1790 }
 0x361   :  { %1690 = vrot.lane.b32.xlu1 %v1460_v63, %s2363_s15  ;;  %1831 = vrot.lane.b32.xlu0 %v1463_v18, %s2365_s16 }
 0x363   :  { %v3744_v12 = vpop.permute.xlu1 %1646  ;;  %v3746_v35 = vpop.permute.xlu0 %1788 }
 0x365   :  { %1688 = vrot.lane.b32.xlu1 %v1457_v19, %s2363_s15  ;;  %1876 = vrot.lane.b32.xlu0 %v1505_v30, %s2366_s17  ;;  %v3802_v19 = vsel %vm396_vm2, %v1491_v47, %v1492_v14 }
 0x367   :  { %v3751_v46 = vpop.permute.xlu1 %1644  ;;  %v3753_v5 = vpop.permute.xlu0 %1786 }
 0x369   :  { %1548 = vrot.lane.b32.xlu1 %v3756_v61, %s2357_s0  ;;  %1736 = vrot.lane.b32.xlu0 %v1499_v16, %s2367_s2  ;;  %v1488_v16 = vrot.slane %v3588_v34, 2 }
 0x36b   :  { %v3762_v49 = vpop.permute.xlu1 %1642  ;;  %v3764_v18 = vpop.permute.xlu0 %1784  ;;  %v3817_v11 = vsel %vm396_vm2, %v1488_v16, %v1489_v48 }
 0x36d   :  { %1593 = vrot.lane.b32.xlu1 %v3767_v4, %s2360_s24  ;;  %1829 = vrot.lane.b32.xlu0 %v1460_v63, %s2365_s16 }
 0x36f   :  { %v3774_v30 = vpop.permute.xlu1 %1640  ;;  %v3776_v60 = vpop.permute.xlu0 %1636 }
 0x371   :  { %1686 = vrot.lane.b32.xlu1 %v3555_v22, %s2363_s15  ;;  %1874 = vrot.lane.b32.xlu0 %v1502_v3, %s2366_s17 }
 0x373   :  { %v3784_v36 = vpop.permute.xlu1 %1638  ;;  %v3786_v63 = vpop.permute.xlu0 %1634 }
 0x375   :  { %1546 = vrot.lane.b32.xlu1 %v3790_v62, %s2357_s0  ;;  %1734 = vrot.lane.b32.xlu0 %v3564_v40, %s2367_s2 }
 0x377   :  { %v3797_v25 = vpop.permute.xlu1 %1780  ;;  %v3799_v3 = vpop.permute.xlu0 %1632 }
 0x379   :  { %1591 = vrot.lane.b32.xlu1 %v3802_v19, %s2360_s24  ;;  %1544 = vrot.lane.b32.xlu0 %v3805_v44, %s2357_s0 }
 0x37b   :  { %v3812_v50 = vpop.permute.xlu1 %1778  ;;  %v3814_v15 = vpop.permute.xlu0 %1630 }
 0x37c   :  { %4179 = vst [vmem:[#allocation2_spill] sm:$0xff] %v3814_v15 }
 0x37d   :  { %1684 = vrot.lane.b32.xlu1 %v3756_v61, %s2363_s15  ;;  %1589 = vrot.lane.b32.xlu0 %v3817_v11, %s2360_s24 }
 0x37f   :  { %v3825_v8 = vpop.permute.xlu1 %1776  ;;  %v3827_v39 = vpop.permute.xlu0 %1628 }
 0x380   :  { %4180 = vst [vmem:[#allocation3_spill] sm:$0xff] %v3827_v39  ;;  %v3849_v39 = vsel %vm396_vm2, %v1485_v45, %v1486_v41 }
 0x381   :  { %1732 = vrot.lane.b32.xlu1 %v3767_v4, %s2367_s2  ;;  %1682 = vrot.lane.b32.xlu0 %v3790_v62, %s2363_s15 }
 0x383   :  { %v3834_v47 = vpop.permute.xlu1 %1774  ;;  %v3836_v14 = vpop.permute.xlu0 %1626 }
 0x384   :  { %4181 = vst [vmem:[#allocation4_spill] sm:$0xff] %v3834_v47  ;;  %4182 = vst [vmem:[#allocation5_spill] sm:$0xff] %v3836_v14  ;;  %v1440_v14 = vrot.slane %v3611_v23, 1  ;;  %v1483_v47 = vrot.slane %v1392_v56, 2 }
 0x385   :  { %1825 = vrot.lane.b32.xlu1 %v3555_v22, %s2365_s16  ;;  %1542 = vrot.lane.b32.xlu0 %v3839_v0, %s2357_s0 }
 0x387   :  { %v3846_v16 = vpop.permute.xlu1 %1772  ;;  %v1608_v48 = vpop.permute.xlu0 %1607 }
 0x388   :  { %4183 = vst [vmem:[#allocation6_spill] sm:$0xff] %v3846_v16  ;;  %v1441_v16 = vrot.slane %v1392_v56, 1 }
 0x389   :  { %1870 = vrot.lane.b32.xlu1 %v3564_v40, %s2366_s17  ;;  %1587 = vrot.lane.b32.xlu0 %v3849_v39, %s2360_s24 }
 0x38b   :  { %v1563_v29 = vpop.permute.xlu1 %1562  ;;  %v1703_v22 = vpop.permute.xlu0 %1702 }
 0x38c   :  { %v1917_v59 = vsel %vm843_vm5, %v3463_v17, %v1563_v29  ;;  %v1482_v29 = vrot.slane %v3611_v23, 2 }
 0x38d   :  { %v1932_v45 = vsel %vm876_vm7, %v1917_v59, %v1608_v48  ;;  %1730 = vrot.lane.b32.xlu1 %v3802_v19, %s2367_s2  ;;  %1680 = vrot.lane.b32.xlu0 %v3805_v44, %s2363_s15  ;;  %v3871_v59 = vsel %vm350_vm1, %v1440_v14, %v1441_v16 }
 0x38e   :  { %v1948_v40 = vsel %vm910_vm9, %v1932_v45, %v3714_v55 }
 0x38f   :  { %v1964_v21 = vsel %vm944_vm11, %v1948_v40, %v1703_v22  ;;  %v1561_v41 = vpop.permute.xlu1 %1560  ;;  %v1751_v17 = vpop.permute.xlu0 %1750 }
 0x390   :  { %v1981_v48 = vsel %vm1965_vm13, %v1964_v21, %v1751_v17  ;;  %v1916_v22 = vsel %vm843_vm5, %v3479_v37, %v1561_v41  ;;  %v1391_v37 = vsel %vm285_vm0, %v3613_v10, 0.0  ;;  %v1310_v10 = vmax.f32 %v3597_v2, 0.0 }
 0x391   :  { %v1998_v15 = vsel %vm1982_vm14, %v1981_v48, %v3687_v7  ;;  %1823 = vrot.lane.b32.xlu1 %v3756_v61, %s2365_s16  ;;  %1540 = vrot.lane.b32.xlu0 %v3871_v59, %s2357_s0  ;;  %v3888_v61 = vsel %vm396_vm2, %v1482_v29, %v1483_v47  ;;  %v1437_v47 = vrot.slane %v3623_v51, 1  ;;  %v1438_v29 = vrot.slane %v1391_v37, 1 }
 0x392   :  { %v2015_v55 = vsel %vm1999_vm15, %v1998_v15, %v3694_v42  ;;  %v4184_v15 = vmov 0.0   ;;  %v1342_v2 = vrot.slane %v1310_v10, 7 }
 0x393   :  { %v1606_v14 = vpop.permute.xlu1 %1605  ;;  %v1749_v16 = vpop.permute.xlu0 %1748  ;;  %v2032_v56 = vsel %vm2016_vm3, %v2015_v55, %v3705_v58 }
 0x394   :  { %v1931_v45 = vsel %vm876_vm7, %v1916_v22, %v1606_v14  ;;  %2298 = vmatpush3.xpose.msk.msra.mxu1 %vm2034_vm4, %v2032_v56  ;;  %v3912_v56 = vsel %vm350_vm1, %v1437_v47, %v1438_v29 }
 0x395   :  { %1868 = vrot.lane.b32.xlu1 %v3767_v4, %s2366_s17  ;;  %1585 = vrot.lane.b32.xlu0 %v3888_v61, %s2360_s24  ;;  %v1947_v40 = vsel %vm910_vm9, %v1931_v45, %v3721_v52  ;;  %v1480_v45 = vrot.slane %v1391_v37, 2 }
 0x396   :  { %2299 = vmatprep.subr.mxu1 %v4184_v15 }
 0x397   :  { %v1701_v21 = vpop.permute.xlu1 %1700  ;;  %v1842_v41 = vpop.permute.xlu0 %1841 }
 0x398   :  { %v1963_v17 = vsel %vm944_vm11, %v1947_v40, %v1701_v21 }
 0x399   :  { %v1980_v4 = vsel %vm1965_vm13, %v1963_v17, %v1749_v16  ;;  %1728 = vrot.lane.b32.xlu1 %v3817_v11, %s2367_s2  ;;  %1678 = vrot.lane.b32.xlu0 %v3839_v0, %s2363_s15  ;;  %v1479_v16 = vrot.slane %v3623_v51, 2 }
 0x39a   :  { %v1997_v52 = vsel %vm1982_vm14, %v1980_v4, %v3716_v38 }
 0x39b   :  { %v2014_v48 = vsel %vm1999_vm15, %v1997_v52, %v1842_v41  ;;  %v1559_v55 = vpop.permute.xlu1 %1558  ;;  %v1887_v22 = vpop.permute.xlu0 %1886  ;;  %v3925_v37 = vsel %vm396_vm2, %v1479_v16, %v1480_v45 }
 0x39c   :  { %v2031_v14 = vsel %vm2016_vm3, %v2014_v48, %v1887_v22  ;;  %v1915_v38 = vsel %vm843_vm5, %v3493_v9, %v1559_v55  ;;  %v1390_v9 = vsel %vm285_vm0, %v1342_v2, 0.0 }
 0x39d   :  { %1821 = vrot.lane.b32.xlu1 %v3790_v62, %s2365_s16  ;;  %1538 = vrot.lane.b32.xlu0 %v3912_v56, %s2357_s0  ;;  %v3932_v62 = vsel %vm285_vm0, 0.0, %v1342_v2  ;;  %v1435_v52 = vrot.slane %v1390_v9, 1  ;;  %v1477_v2 = vrot.slane %v1390_v9, 2  ;;  %vm2368_vm0 = vmmov 0  }
 0x39e   :  { %2300 = vmatpush3.xpose.msk.msra.mxu1 %vm2034_vm4, %v2031_v14  ;;  %v1434_v10 = vrot.slane %v3932_v62, 1  ;;  %v1476_v45 = vrot.slane %v3932_v62, 2  ;;  %2329 = vmatprep.mubr.msk.f32.mxu1 %vm2368_vm0, %v4184_v15 }
 0x39f   :  { %v1604_v40 = vpop.permute.xlu1 %1603  ;;  %v1747_v21 = vpop.permute.xlu0 %1746  ;;  %2301 = vmatprep.subr.mxu1 %v4184_v15 }
 0x3a0   :  { %v1930_v41 = vsel %vm876_vm7, %v1915_v38, %v1604_v40  ;;  %v1436_v16 = vsel %vm350_vm1, %v1434_v10, %v1435_v52 }
 0x3a1   :  { %1866 = vrot.lane.b32.xlu1 %v3802_v19, %s2366_s17  ;;  %1583 = vrot.lane.b32.xlu0 %v3925_v37, %s2360_s24  ;;  %v1946_v17 = vsel %vm910_vm9, %v1930_v41, %v3729_v33  ;;  %v1478_v41 = vsel %vm396_vm2, %v1476_v45, %v1477_v2 }
 0x3a3   :  { %v1699_v47 = vpop.permute.xlu1 %1698  ;;  %v1840_v29 = vpop.permute.xlu0 %1839 }
 0x3a4   :  { %v1962_v4 = vsel %vm944_vm11, %v1946_v17, %v1699_v47 }
 0x3a5   :  { %v1979_v19 = vsel %vm1965_vm13, %v1962_v4, %v1747_v21  ;;  %1726 = vrot.lane.b32.xlu1 %v3849_v39, %s2367_s2  ;;  %1676 = vrot.lane.b32.xlu0 %v3871_v59, %s2363_s15 }
 0x3a6   :  { %v1996_v48 = vsel %vm1982_vm14, %v1979_v19, %v3723_v28 }
 0x3a7   :  { %v2013_v33 = vsel %vm1999_vm15, %v1996_v48, %v1840_v29  ;;  %v1557_v55 = vpop.permute.xlu1 %1556  ;;  %v1885_v22 = vpop.permute.xlu0 %1884 }
 0x3a8   :  { %v2030_v14 = vsel %vm2016_vm3, %v2013_v33, %v1885_v22  ;;  %v1914_v28 = vsel %vm843_vm5, %v3508_v1, %v1557_v55 }
 0x3a9   :  { %1819 = vrot.lane.b32.xlu1 %v3805_v44, %s2365_s16  ;;  %1536 = vrot.lane.b32.xlu0 %v1436_v16, %s2357_s0 }
 0x3aa   :  { %2302 = vmatpush3.xpose.msk.msra.mxu1 %vm2034_vm4, %v2030_v14 }
 0x3ab   :  { %v1602_v38 = vpop.permute.xlu1 %1601  ;;  %v1745_v40 = vpop.permute.xlu0 %1744  ;;  %2303 = vmatprep.subr.mxu1 %v4184_v15 }
 0x3ac   :  { %v1929_v21 = vsel %vm876_vm7, %v1914_v28, %v1602_v38 }
 0x3ad   :  { %1864 = vrot.lane.b32.xlu1 %v3817_v11, %s2366_s17  ;;  %1581 = vrot.lane.b32.xlu0 %v1478_v41, %s2360_s24  ;;  %v1945_v44 = vsel %vm910_vm9, %v1929_v21, %v3736_v43 }
 0x3af   :  { %v1697_v9 = vpop.permute.xlu1 %1696  ;;  %v1838_v17 = vpop.permute.xlu0 %1837 }
 0x3b0   :  { %v1961_v1 = vsel %vm944_vm11, %v1945_v44, %v1697_v9 }
 0x3b1   :  { %v1978_v47 = vsel %vm1965_vm13, %v1961_v1, %v1745_v40  ;;  %1724 = vrot.lane.b32.xlu1 %v3888_v61, %s2367_s2  ;;  %1674 = vrot.lane.b32.xlu0 %v3912_v56, %s2363_s15 }
 0x3b2   :  { %v1995_v11 = vsel %vm1982_vm14, %v1978_v47, %v3731_v20 }
 0x3b3   :  { %v2012_v29 = vsel %vm1999_vm15, %v1995_v11, %v1838_v17  ;;  %v1555_v4 = vpop.permute.xlu1 %1554  ;;  %v1883_v10 = vpop.permute.xlu0 %1882 }
 0x3b4   :  { %v2029_v43 = vsel %vm2016_vm3, %v2012_v29, %v1883_v10  ;;  %v1913_v52 = vsel %vm843_vm5, %v3523_v24, %v1555_v4 }
 0x3b5   :  { %1817 = vrot.lane.b32.xlu1 %v3839_v0, %s2365_s16  ;;  %1722 = vrot.lane.b32.xlu0 %v3925_v37, %s2367_s2 }
 0x3b6   :  { %2304 = vmatpush3.xpose.msk.msra.mxu1 %vm2034_vm4, %v2029_v43 }
 0x3b7   :  { %v1600_v19 = vpop.permute.xlu1 %1599  ;;  %v1743_v48 = vpop.permute.xlu0 %1742  ;;  %2305 = vmatprep.subr.mxu1 %v4184_v15 }
 0x3b8   :  { %v1928_v20 = vsel %vm876_vm7, %v1913_v52, %v1600_v19 }
 0x3b9   :  { %1862 = vrot.lane.b32.xlu1 %v3849_v39, %s2366_s17  ;;  %1624 = vrot.lane.b32.xlu0 %v3932_v62, %s2359_s23  ;;  %v1944_v0 = vsel %vm910_vm9, %v1928_v20, %v3744_v12  ;;  %v1903_v20 = vsel %vm843_vm5, %v2619_v32, %v3697_v26 }
 0x3bb   :  { %v1695_v33 = vpop.permute.xlu1 %1694  ;;  %v1836_v55 = vpop.permute.xlu0 %1835 }
 0x3bc   :  { %v1960_v22 = vsel %vm944_vm11, %v1944_v0, %v1695_v33  ;;  %v4043_v33 = vsel %vm876_vm7, %v1903_v20, %v3707_v57 }
 0x3bd   :  { %v1977_v24 = vsel %vm1965_vm13, %v1960_v22, %v1743_v48  ;;  %1770 = vrot.lane.b32.xlu1 %v3611_v23, %s2364_s1  ;;  %1672 = vrot.lane.b32.xlu0 %v1436_v16, %s2363_s15 }
 0x3be   :  { %v1994_v39 = vsel %vm1982_vm14, %v1977_v24, %v3738_v6 }
 0x3bf   :  { %v2011_v14 = vsel %vm1999_vm15, %v1994_v39, %v1836_v55  ;;  %v1553_v45 = vpop.permute.xlu1 %1552  ;;  %v1881_v2 = vpop.permute.xlu0 %1880 }
 0x3c0   :  { %v2028_v12 = vsel %vm2016_vm3, %v2011_v14, %v1881_v2  ;;  %v1912_v16 = vsel %vm843_vm5, %v3536_v53, %v1553_v45 }
 0x3c1   :  { %1815 = vrot.lane.b32.xlu1 %v3871_v59, %s2365_s16  ;;  %1720 = vrot.lane.b32.xlu0 %v1478_v41, %s2367_s2 }
 0x3c2   :  { %2306 = vmatpush3.xpose.msk.msra.mxu1 %vm2034_vm4, %v2028_v12 }
 0x3c3   :  { %v1598_v6 = vpop.permute.xlu1 %1597  ;;  %v1741_v28 = vpop.permute.xlu0 %1740  ;;  %2307 = vmatprep.subr.mxu1 %v4184_v15 }
 0x3c4   :  { %v1927_v38 = vsel %vm876_vm7, %v1912_v16, %v1598_v6 }
 0x3c5   :  { %1860 = vrot.lane.b32.xlu1 %v3888_v61, %s2366_s17  ;;  %1813 = vrot.lane.b32.xlu0 %v3912_v56, %s2365_s16  ;;  %v1943_v59 = vsel %vm910_vm9, %v1927_v38, %v3751_v46 }
 0x3c7   :  { %v1693_v40 = vpop.permute.xlu1 %1692  ;;  %v1834_v21 = vpop.permute.xlu0 %1833 }
 0x3c8   :  { %v1959_v41 = vsel %vm944_vm11, %v1943_v59, %v1693_v40 }
 0x3c9   :  { %v1976_v53 = vsel %vm1965_vm13, %v1959_v41, %v1741_v28  ;;  %1768 = vrot.lane.b32.xlu1 %v3623_v51, %s2364_s1 }
 0x3ca   :  { %v1993_v44 = vsel %vm1982_vm14, %v1976_v53, %v3746_v35 }
 0x3cb   :  { %v2010_v61 = vsel %vm1999_vm15, %v1993_v44, %v1834_v21  ;;  %v1551_v9 = vpop.permute.xlu1 %1550  ;;  %v1879_v17 = vpop.permute.xlu0 %1878 }
 0x3cc   :  { %v2027_v56 = vsel %vm2016_vm3, %v2010_v61, %v1879_v17  ;;  %v1911_v46 = vsel %vm843_vm5, %v3551_v27, %v1551_v9 }
 0x3cd   :  { %1858 = vrot.lane.b32.xlu1 %v3925_v37, %s2366_s17  ;;  %2308 = vmatpush3.xpose.msk.msra.mxu1 %vm2034_vm4, %v2027_v56 }
 0x3ce   :  { %2309 = vmatprep.subr.mxu1 %v4184_v15 }
 0x3cf   :  { %v1596_v1 = vpop.permute.xlu1 %1595  ;;  %v1739_v47 = vpop.permute.xlu0 %1738 }
 0x3d0   :  { %v1926_v35 = vsel %vm876_vm7, %v1911_v46, %v1596_v1 }
 0x3d1   :  { %v1942_v11 = vsel %vm910_vm9, %v1926_v35, %v3762_v49 }
 0x3d3   :  { %v1691_v29 = vpop.permute.xlu1 %1690  ;;  %v1832_v4 = vpop.permute.xlu0 %1831 }
 0x3d4   :  { %v1958_v10 = vsel %vm944_vm11, %v1942_v11, %v1691_v29 }
 0x3d5   :  { %v1975_v37 = vsel %vm1965_vm13, %v1958_v10, %v1739_v47 }
 0x3d6   :  { %v1992_v43 = vsel %vm1982_vm14, %v1975_v37, %v3753_v5  ;;  %v1941_v5 = vsel %vm910_vm9, %v4043_v33, %v3774_v30 }
 0x3d7   :  { %v2009_v52 = vsel %vm1999_vm15, %v1992_v43, %v1832_v4  ;;  %v1689_v19 = vpop.permute.xlu1 %1688  ;;  %v1877_v27 = vpop.permute.xlu0 %1876 }
 0x3d8   :  { %v2026_v48 = vsel %vm2016_vm3, %v2009_v52, %v1877_v27  ;;  %v1957_v55 = vsel %vm944_vm11, %v1941_v5, %v1689_v19 }
 0x3d9   :  { %2310 = vmatpush3.xpose.msk.msra.mxu1 %vm2034_vm4, %v2026_v48 }
 0x3da   :  { %2311 = vmatprep.subr.mxu1 %v4184_v15 }
 0x3db   :  { %v1549_v49 = vpop.permute.xlu1 %1548  ;;  %v1737_v0 = vpop.permute.xlu0 %1736 }
 0x3dc   :  { %v1974_v22 = vsel %vm1965_vm13, %v1957_v55, %v1737_v0  ;;  %v1910_v26 = vsel %vm843_vm5, %v3559_v13, %v1549_v49 }
 0x3dd   :  { %v1991_v39 = vsel %vm1982_vm14, %v1974_v22, %v3764_v18 }
 0x3df   :  { %v1594_v24 = vpop.permute.xlu1 %1593  ;;  %v1830_v32 = vpop.permute.xlu0 %1829 }
 0x3e0   :  { %v1925_v14 = vsel %vm876_vm7, %v1910_v26, %v1594_v24  ;;  %v2008_v57 = vsel %vm1999_vm15, %v1991_v39, %v1830_v32 }
 0x3e1   :  { %v1940_v12 = vsel %vm910_vm9, %v1925_v14, %v3784_v36 }
 0x3e3   :  { %v1687_v45 = vpop.permute.xlu1 %1686  ;;  %v1875_v2 = vpop.permute.xlu0 %1874 }
 0x3e4   :  { %v2025_v30 = vsel %vm2016_vm3, %v2008_v57, %v1875_v2  ;;  %v1956_v13 = vsel %vm944_vm11, %v1940_v12, %v1687_v45  ;;  %v4185_v12 = vld [vmem:[#allocation2_spill] sm:$0xff] }
 0x3e5   :  { %2312 = vmatpush3.xpose.msk.msra.mxu1 %vm2034_vm4, %v2025_v30 }
 0x3e6   :  { %2313 = vmatprep.subr.mxu1 %v4184_v15 }
 0x3e7   :  { %v1547_v16 = vpop.permute.xlu1 %1546  ;;  %v1735_v6 = vpop.permute.xlu0 %1734 }
 0x3e8   :  { %v1973_v18 = vsel %vm1965_vm13, %v1956_v13, %v1735_v6  ;;  %v1909_v53 = vsel %vm843_vm5, %v3574_v31, %v1547_v16 }
 0x3e9   :  { %v1990_v28 = vsel %vm1982_vm14, %v1973_v18, %v3687_v7 }
 0x3ea   :  { %v2007_v38 = vsel %vm1999_vm15, %v1990_v28, %v3694_v42  ;;  %v4186_v28 = vld [vmem:[#allocation4_spill] sm:$0xff] }
 0x3eb   :  { %v1592_v59 = vpop.permute.xlu1 %1591  ;;  %v1545_v40 = vpop.permute.xlu0 %1544  ;;  %v2024_v21 = vsel %vm2016_vm3, %v2007_v38, %v3705_v58 }
 0x3ec   :  { %2314 = vmatpush3.xpose.msk.msra.mxu1 %vm2034_vm4, %v2024_v21  ;;  %v1924_v44 = vsel %vm876_vm7, %v1909_v53, %v1592_v59  ;;  %v1908_v11 = vsel %vm843_vm5, %v3588_v34, %v1545_v40 }
 0x3ed   :  { %2315 = vmatprep.subr.mxu1 %v4184_v15  ;;  %v1939_v42 = vsel %vm910_vm9, %v1924_v44, %v3776_v60 }
 0x3ef   :  { %v1685_v36 = vpop.permute.xlu1 %1684  ;;  %v1590_v41 = vpop.permute.xlu0 %1589 }
 0x3f0   :  { %v1955_v9 = vsel %vm944_vm11, %v1939_v42, %v1685_v36  ;;  %v1923_v60 = vsel %vm876_vm7, %v1908_v11, %v1590_v41 }
 0x3f3   :  { %v1733_v7 = vpop.permute.xlu1 %1732  ;;  %v1683_v61 = vpop.permute.xlu0 %1682 }
 0x3f4   :  { %v1972_v58 = vsel %vm1965_vm13, %v1955_v9, %v1733_v7  ;;  %v4187_v7 = vld [vmem:[#allocation3_spill] sm:$0xff] }
 0x3f5   :  { %v1989_v46 = vsel %vm1982_vm14, %v1972_v58, %v3797_v25  ;;  %v1938_v25 = vsel %vm910_vm9, %v1923_v60, %v3786_v63 }
 0x3f6   :  { %v1954_v10 = vsel %vm944_vm11, %v1938_v25, %v1683_v61 }
 0x3f7   :  { %v1826_v17 = vpop.permute.xlu1 %1825  ;;  %v1543_v56 = vpop.permute.xlu0 %1542 }
 0x3f8   :  { %v2006_v1 = vsel %vm1999_vm15, %v1989_v46, %v1826_v17  ;;  %v1907_v49 = vsel %vm843_vm5, %v3601_v54, %v1543_v56  ;;  %v4188_v56 = vld [vmem:[#allocation6_spill] sm:$0xff] }
 0x3fb   :  { %v1871_v47 = vpop.permute.xlu1 %1870  ;;  %v1588_v31 = vpop.permute.xlu0 %1587 }
 0x3fc   :  { %v2023_v35 = vsel %vm2016_vm3, %v2006_v1, %v1871_v47  ;;  %v1922_v63 = vsel %vm876_vm7, %v1907_v49, %v1588_v31 }
 0x3fd   :  { %2316 = vmatpush3.xpose.msk.msra.mxu1 %vm2034_vm4, %v2023_v35 }
 0x3fe   :  { %2317 = vmatprep.subr.mxu1 %v4184_v15 }
 0x3ff   :  { %v1731_v29 = vpop.permute.xlu1 %1730  ;;  %v1681_v4 = vpop.permute.xlu0 %1680 }
 0x400   :  { %v1971_v37 = vsel %vm1965_vm13, %v1954_v10, %v1731_v29 }
 0x401   :  { %v1988_v34 = vsel %vm1982_vm14, %v1971_v37, %v3812_v50  ;;  %v1937_v50 = vsel %vm910_vm9, %v1922_v63, %v3799_v3 }
 0x402   :  { %v1953_v55 = vsel %vm944_vm11, %v1937_v50, %v1681_v4  ;;  %v4189_v4 = vld [vmem:[#allocation5_spill] sm:$0xff] }
 0x403   :  { %v1824_v43 = vpop.permute.xlu1 %1823  ;;  %v1541_v52 = vpop.permute.xlu0 %1540 }
 0x404   :  { %v2005_v19 = vsel %vm1999_vm15, %v1988_v34, %v1824_v43  ;;  %v1906_v45 = vsel %vm843_vm5, %v3611_v23, %v1541_v52 }
 0x407   :  { %v1869_v27 = vpop.permute.xlu1 %1868  ;;  %v1586_v48 = vpop.permute.xlu0 %1585 }
 0x408   :  { %v2022_v20 = vsel %vm2016_vm3, %v2005_v19, %v1869_v27  ;;  %v1921_v3 = vsel %vm876_vm7, %v1906_v45, %v1586_v48 }
 0x409   :  { %2318 = vmatpush3.xpose.msk.msra.mxu1 %vm2034_vm4, %v2022_v20 }
 0x40a   :  { %2319 = vmatprep.subr.mxu1 %v4184_v15 }
 0x40b   :  { %v1729_v0 = vpop.permute.xlu1 %1728  ;;  %v1679_v5 = vpop.permute.xlu0 %1678 }
 0x40c   :  { %v1970_v22 = vsel %vm1965_vm13, %v1953_v55, %v1729_v0 }
 0x40d   :  { %v1987_v54 = vsel %vm1982_vm14, %v1970_v22, %v3825_v8  ;;  %v1936_v8 = vsel %vm910_vm9, %v1921_v3, %v4185_v12  ;;  %v2166_v12 = vld [vmem:[%s4174_s5] sm:$0xff] }
 0x40e   :  { %v1952_v13 = vsel %vm944_vm11, %v1936_v8, %v1679_v5 }
 0x40f   :  { %v1822_v24 = vpop.permute.xlu1 %1821  ;;  %v1539_v32 = vpop.permute.xlu0 %1538 }
 0x410   :  { %v2004_v26 = vsel %vm1999_vm15, %v1987_v54, %v1822_v24  ;;  %v1905_v36 = vsel %vm843_vm5, %v3623_v51, %v1539_v32  ;;  %v2369_v54 = vmov 0  }
 0x411   :  { %2348 = vset.pattern.permute.xlu0 %v2369_v54  ;;  %2349 = vset.pattern.permute.xlu1 %v2369_v54 }
 0x413   :  { %v1867_v39 = vpop.permute.xlu1 %1866  ;;  %v1584_v14 = vpop.permute.xlu0 %1583 }
 0x414   :  { %v2021_v57 = vsel %vm2016_vm3, %v2004_v26, %v1867_v39  ;;  %v1920_v41 = vsel %vm876_vm7, %v1905_v36, %v1584_v14 }
 0x415   :  { %2320 = vmatpush3.xpose.msk.msra.mxu1 %vm2034_vm4, %v2021_v57  ;;  %v1935_v61 = vsel %vm910_vm9, %v1920_v41, %v4187_v7 }
 0x416   :  { %2321 = vmatprep.subr.mxu1 %v4184_v15 }
 0x417   :  { %v1727_v2 = vpop.permute.xlu1 %1726  ;;  %v1677_v30 = vpop.permute.xlu0 %1676 }
 0x418   :  { %v1969_v16 = vsel %vm1965_vm13, %v1952_v13, %v1727_v2  ;;  %v1951_v42 = vsel %vm944_vm11, %v1935_v61, %v1677_v30 }
 0x419   :  { %v1986_v23 = vsel %vm1982_vm14, %v1969_v16, %v4186_v28  ;;  %v2170_v16 = vld [vmem:[%s4175_s6] sm:$0xff] }
 0x41b   :  { %v1820_v6 = vpop.permute.xlu1 %1819  ;;  %v1537_v18 = vpop.permute.xlu0 %1536 }
 0x41c   :  { %v2003_v38 = vsel %vm1999_vm15, %v1986_v23, %v1820_v6  ;;  %v1904_v35 = vsel %vm843_vm5, %v3932_v62, %v1537_v18 }
 0x41f   :  { %v1865_v59 = vpop.permute.xlu1 %1864  ;;  %v1582_v40 = vpop.permute.xlu0 %1581 }
 0x420   :  { %v2020_v21 = vsel %vm2016_vm3, %v2003_v38, %v1865_v59  ;;  %v1919_v60 = vsel %vm876_vm7, %v1904_v35, %v1582_v40 }
 0x421   :  { %2322 = vmatpush3.xpose.msk.msra.mxu1 %vm2034_vm4, %v2020_v21  ;;  %v1934_v25 = vsel %vm910_vm9, %v1919_v60, %v4189_v4 }
 0x422   :  { %2323 = vmatprep.subr.mxu1 %v4184_v15 }
 0x423   :  { %v1725_v53 = vpop.permute.xlu1 %1724  ;;  %v1675_v44 = vpop.permute.xlu0 %1674 }
 0x424   :  { %v1968_v9 = vsel %vm1965_vm13, %v1951_v42, %v1725_v53  ;;  %v1950_v37 = vsel %vm944_vm11, %v1934_v25, %v1675_v44 }
 0x425   :  { %v1985_v51 = vsel %vm1982_vm14, %v1968_v9, %v4188_v56 }
 0x427   :  { %v1818_v58 = vpop.permute.xlu1 %1817  ;;  %v1723_v17 = vpop.permute.xlu0 %1722 }
 0x428   :  { %v2002_v46 = vsel %vm1999_vm15, %v1985_v51, %v1818_v58  ;;  %v1967_v43 = vsel %vm1965_vm13, %v1950_v37, %v1723_v17 }
 0x42b   :  { %v1863_v1 = vpop.permute.xlu1 %1862  ;;  %v1625_v31 = vpop.permute.xlu0 %1624 }
 0x42c   :  { %v2019_v47 = vsel %vm2016_vm3, %v2002_v46, %v1863_v1  ;;  %v1933_v48 = vsel %vm910_vm9, %v4043_v33, %v1625_v31  ;;  %v2033_v33 = vld [vmem:[%s4173_s4] sm:$0xff] }
 0x42d   :  { %2324 = vmatpush3.xpose.msk.msra.mxu1 %vm2034_vm4, %v2019_v47 }
 0x42e   :  { %2325 = vmatprep.subr.mxu1 %v4184_v15 }
 0x42f   :  { %v1771_v11 = vpop.permute.xlu1 %1770  ;;  %v1673_v29 = vpop.permute.xlu0 %1672 }
 0x430   :  { %v1984_v52 = vsel %vm1982_vm14, %v1967_v43, %v1771_v11  ;;  %v1949_v20 = vsel %vm944_vm11, %v1933_v48, %v1673_v29 }
 0x433   :  { %v1816_v10 = vpop.permute.xlu1 %1815  ;;  %v1721_v27 = vpop.permute.xlu0 %1720 }
 0x434   :  { %v2001_v34 = vsel %vm1999_vm15, %v1984_v52, %v1816_v10  ;;  %v1966_v49 = vsel %vm1965_vm13, %v1949_v20, %v1721_v27 }
 0x437   :  { %v1861_v19 = vpop.permute.xlu1 %1860  ;;  %v1814_v5 = vpop.permute.xlu0 %1813 }
 0x438   :  { %v2018_v62 = vsel %vm2016_vm3, %v2001_v34, %v1861_v19 }
 0x439   :  { %2326 = vmatpush3.xpose.msk.msra.mxu1 %vm2034_vm4, %v2018_v62 }
 0x43a   :  { %2327 = vmatprep.subr.mxu1 %v4184_v15 }
 0x43b   :  { %v1769_v63 = vpop.permute.xlu1 %1768 }
 0x43c   :  { %v1983_v0 = vsel %vm1982_vm14, %v1966_v49, %v1769_v63 }
 0x43d   :  { %v2000_v55 = vsel %vm1999_vm15, %v1983_v0, %v1814_v5 }
 0x43f   :  { %v1859_v50 = vpop.permute.xlu1 %1858 }
 0x440   :  { %v2017_v22 = vsel %vm2016_vm3, %v2000_v55, %v1859_v50 }
 0x441   :  { %2328 = vmatpush3.xpose.msk.msra.mxu1 %vm2034_vm4, %v2017_v22 }
 0x444   :  { %2330 = vmatmul.mubr.msk.f32.vlgmr.msra.gmra.mxu1 %vm2034_vm4, %v2033_v33 }
 0x504   :  { %v2152_v15 = vpop.f32.mrf.mxu1 }
 0x505   :  { %v2158_v24 = vmul.f32 %v2152_v15, %v2152_v15  ;;  %2156 = vadd.xlane.f32.xlu0 %v2152_v15 }
 0x506   :  { %v2331_v32 = vpop.f32.mrf.mxu1 }
 0x507   :  { %2159 = vadd.xlane.f32.xlu1 %v2158_v24 }
 0x58e   :  { %v2157_v26 = vpop.xlane.xlu0 %2156 }
 0x58f   :  { %v2161_v39 = vmul.f32 0.0078125, %v2157_v26 }
 0x590   :  { %v2160_v14 = vpop.xlane.xlu1 %2159 }
 0x591   :  { %v2163_v57 = vmul.f32 %v2161_v39, %v2161_v39  ;;  %v2162_v45 = vmul.f32 0.0078125, %v2160_v14 }
 0x593   :  { %v2164_v3 = vsub.f32 %v2162_v45, %v2163_v57 }
 0x595   :  { %v2165_v2 = vmax.f32 %v2164_v3, 0.0 }
 0x597   :  { %v2167_v30 = vadd.f32 1e-05, %v2165_v2 }
 0x599   :  { %2352 = vrsqrt.f32 %v2167_v30 }
 0x5a6   :  { %v2353_v8 = vpop.eup %2352 }
 0x5a7   :  { %v2169_v13 = vmul.f32 %v2353_v8, %v2166_v12 }
 0x5a9   :  { %2175 = vperm.xlu0 %2348, %v2169_v13   ;;  %v2171_v6 = vmul.f32 %v2169_v13, %v2161_v39 }
 0x5ab   :  { %v2172_v18 = vsub.f32 %v2170_v16, %v2171_v6 }
 0x5ad   :  { %2181 = vperm.xlu1 %2349, %v2172_v18  }
 0x624   :  { %v2176_v28 = vpop.permute.xlu0 %2175 }
 0x625   :  { %v2178_v23 = vmul.f32 %v2176_v28, %v2152_v15 }
 0x628   :  { %v2182_v38 = vpop.permute.xlu1 %2181 }
 0x629   :  { %v2184_v59 = vadd.f32 %v2182_v38, %v2178_v23 }
 0x62b   :  { %v2185_v40 = vmax.f32 %v2184_v59, 0.0 }
 0x62d   :  { %2186 = vst [vmem:[%s4176_s7] sm:$0xff] %v2185_v40 }

</bundles_post_ra>
